<compile_context>
chip_gen: v7x
topology: tpu7x:2x2x1
jax: 0.10.0
libtpu: 0.0.40
codegen_flags: <defaults>
</compile_context>

<pallas_src>
import jax
import jax.numpy as jnp
from jax.experimental import pallas as pl
from jax.experimental.pallas import tpu as pltpu

D_IN = 32                               # input_shape = [32]
BOTTLENECK = (8, 8)                     # bottleneck_shape
N_GROUPS = BOTTLENECK[0]                # 8 groups
GROUP = BOTTLENECK[-1]                  # 8 classes per group (argmax axis)
D_BN = N_GROUPS * GROUP                 # 64
NUM_LAYERS = 2                          # MLP "layers" (config-dependent int; chosen = 2)
LN_EPS = 1e-3                           # networks.MLP uses nn.LayerNorm(units, eps=1e-3)
LANE = 128                              # lane width; batch-tile granularity
TB_MAX = 2048                           # max batch tile on the lane axis


def _round_up(n, m):
    return ((n + m - 1) // m) * m


def _num_tensorcores():
    """Best-effort TensorCore count per chip (v7x: 2). Defaults to 1 (v5e/v6e)."""
    try:
        info = pltpu.get_tpu_info()
    except Exception:
        return 1
    for attr in ("num_cores", "core_count", "num_tensorcores", "tensor_core_count"):
        v = getattr(info, attr, None)
        if isinstance(v, int) and v > 0:
            return v
    return 1


def _choose_tile(B, tb_max):
    """Batch tile (multiple of 128 lanes). Only split into multiple grid steps when it
    buys megacore parallelism (>1 TC); otherwise one big tile per the review."""
    b_ceil = _round_up(max(B, 1), LANE)
    n_cores = _num_tensorcores()
    if n_cores > 1 and b_ceil >= 2 * n_cores * LANE:
        tb = _round_up(pl.cdiv(b_ceil, 2 * n_cores), LANE)   # >= 2 steps per core
    else:
        tb = b_ceil
    return int(max(LANE, min(tb_max, tb)))


# ----------------------------- in-kernel helpers -----------------------------

def _silu(x):
    # sigmoid = reciprocal(1 + exp(-x)): exp and the reciprocal both land on the EUP.
    return x * pl.reciprocal(1.0 + jnp.exp(-x), approx=False)


def _layernorm_fm(x, scale, bias):
    """LayerNorm over the feature (sublane) axis 0 of a (D, tb) tile.
    One-pass stats: var = E[x^2] - mean^2 (two independent sublane reductions)."""
    d = x.shape[0]
    inv_d = jnp.float32(1.0 / d)
    s1 = jnp.sum(x, axis=0, keepdims=True)              # (1, tb)
    s2 = jnp.sum(x * x, axis=0, keepdims=True)           # (1, tb)
    mean = s1 * inv_d
    var = jnp.maximum(s2 * inv_d - mean * mean, 0.0)
    return (x - mean) * jax.lax.rsqrt(var + LN_EPS) * scale + bias


def _group_argmax_onehot_fm(h):
    """One-hot of the FIRST argmax within each contiguous group of 8 features.

    h: (64, tb) feature-major logits. After reshaping to (8 groups, 8 classes, tb) each
    group's 8 logits sit on the 8 sublanes of one block, so the group max and the
    first-argmax tie-break are two sublane reductions (max, then min over candidate
    indices). Matches jnp/torch argmax (ties -> lowest index)."""
    tb = h.shape[-1]
    h_r = h.reshape(N_GROUPS, GROUP, tb)                              # (8, 8, tb)
    gmax = jnp.max(h_r, axis=1, keepdims=True)                        # (8, 1, tb)
    kidx = jax.lax.broadcasted_iota(jnp.int32, h_r.shape, 1).astype(jnp.float32)
    cand = jnp.where(h_r == gmax, kidx, jnp.float32(GROUP))
    first = jnp.min(cand, axis=1, keepdims=True)                      # first maximal idx
    code = (kidx == first).astype(h.dtype)
    return code.reshape(D_BN, tb)


# --------------------------------- kernel ------------------------------------

def subgoal_ae_kernel(x_ref, w_ref, ln_ref, out_ref):
    # Feature-major tiles: x (32, tb), activations (64/32, tb), out (32, tb).
    x = x_ref[...]

    # Lazy, per-use reads of the packed transposed weights, lane-dense (2, 64, 128).
    we1_t = w_ref[0, :, :D_IN]                   # (64, 32)  encoder Linear 32->64 (W^T)
    we2_t = w_ref[0, :, D_BN:]                   # (64, 64)  encoder Linear 64->64 (W^T)
    wd1_t = w_ref[1, :D_IN, :D_BN]               # (32, 64)  decoder Linear 64->32 (W^T)
    wd2_t = w_ref[1, :D_IN, D_BN:D_BN + D_IN]    # (32, 32)  decoder Linear 32->32 (W^T)

    # LN scale/bias columns (feature on sublanes), broadcast over the lane (batch) axis.
    es1, eb1 = ln_ref[:, 0:1], ln_ref[:, 1:2]            # (64, 1)
    es2, eb2 = ln_ref[:, 2:3], ln_ref[:, 3:4]            # (64, 1)
    ds1, db1 = ln_ref[:D_IN, 4:5], ln_ref[:D_IN, 5:6]    # (32, 1)
    ds2, db2 = ln_ref[:D_IN, 6:7], ln_ref[:D_IN, 7:8]    # (32, 1)

    # ---- encoder MLP ----
    h = jnp.dot(we1_t, x, preferred_element_type=jnp.float32)        # (64, tb)
    h = _silu(_layernorm_fm(h, es1, eb1))
    h = jnp.dot(we2_t, h, preferred_element_type=jnp.float32)        # (64, tb)
    h = _silu(_layernorm_fm(h, es2, eb2))                            # logits

    # ---- OneHotDist(logits.view(..., 8, 8), unimix_ratio).mode() ----
    code = _group_argmax_onehot_fm(h)                                # (64, tb) one-hot

    # ---- decoder MLP on the flattened one-hot code ----
    d = jnp.dot(wd1_t, code, preferred_element_type=jnp.float32)     # (32, tb)
    d = _silu(_layernorm_fm(d, ds1, db1))
    d = jnp.dot(wd2_t, d, preferred_element_type=jnp.float32)        # (32, tb)
    d = _silu(_layernorm_fm(d, ds2, db2))

    out_ref[...] = d.astype(out_ref.dtype)


# ----------------------------- params & wrapper ------------------------------

def init_params(key):
    """Deterministic synthetic parameters (module __init__ gives the shapes)."""
    ks = jax.random.split(key, 8)

    def lin(k, fan_in, fan_out):
        return jax.random.normal(k, (fan_in, fan_out), jnp.float32) / jnp.sqrt(
            jnp.float32(fan_in))

    def lnp(k, d):
        k1, k2 = jax.random.split(k)
        scale = 1.0 + 0.1 * jax.random.normal(k1, (1, d), jnp.float32)
        bias = 0.1 * jax.random.normal(k2, (1, d), jnp.float32)
        return scale, bias

    we1 = lin(ks[0], D_IN, D_BN)          # encoder Linear 32 -> 64 (no bias)
    es1, eb1 = lnp(ks[1], D_BN)
    we2 = lin(ks[2], D_BN, D_BN)          # encoder Linear 64 -> 64
    es2, eb2 = lnp(ks[3], D_BN)
    wd1 = lin(ks[4], D_BN, D_IN)          # decoder Linear 64 -> 32
    ds1, db1 = lnp(ks[5], D_IN)
    wd2 = lin(ks[6], D_IN, D_IN)          # decoder Linear 32 -> 32
    ds2, db2 = lnp(ks[7], D_IN)
    return [we1, es1, eb1, we2, es2, eb2, wd1, ds1, db1, wd2, ds2, db2]


def pack_params(params):
    """Pack transposed weights lane-dense into (2, 64, 128); LN vectors as (64, 8) cols."""
    (we1, es1, eb1, we2, es2, eb2, wd1, ds1, db1, wd2, ds2, db2) = params
    w = jnp.zeros((2, D_BN, 2 * D_BN), jnp.float32)
    w = w.at[0, :, :D_IN].set(we1.T)                    # (64, 32)
    w = w.at[0, :, D_BN:].set(we2.T)                    # (64, 64)
    w = w.at[1, :D_IN, :D_BN].set(wd1.T)                # (32, 64)
    w = w.at[1, :D_IN, D_BN:D_BN + D_IN].set(wd2.T)     # (32, 32)

    ln = jnp.zeros((D_BN, 8), jnp.float32)
    ln = ln.at[:, 0].set(es1[0]).at[:, 1].set(eb1[0])
    ln = ln.at[:, 2].set(es2[0]).at[:, 3].set(eb2[0])
    ln = ln.at[:D_IN, 4].set(ds1[0]).at[:D_IN, 5].set(db1[0])
    ln = ln.at[:D_IN, 6].set(ds2[0]).at[:D_IN, 7].set(db2[0])
    return w, ln


def subgoal_autoencoder_forward(x, packed_params, tb_max=TB_MAX):
    w_packed, ln_packed = packed_params
    B, d_in = x.shape
    assert d_in == D_IN

    tb = _choose_tile(B, tb_max)
    grid = pl.cdiv(B, tb)
    b_pad = grid * tb

    # Feature-major in the kernel (batch on the 128-lane axis). Transpose + zero-pad in
    # the wrapper; padded tail columns are benign (finite) and sliced off afterwards.
    x_t = x.T                                            # (32, B)
    if b_pad != B:
        x_t = jnp.pad(x_t, ((0, 0), (0, b_pad - B)))

    flops = 2 * b_pad * (D_IN * D_BN + D_BN * D_BN + D_BN * D_IN + D_IN * D_IN)
    transcendentals = b_pad * (D_BN + D_BN + D_IN + D_IN)     # exp per activation
    bytes_accessed = b_pad * 2 * D_IN * 4 + (w_packed.size + ln_packed.size) * 4

    out_t = pl.pallas_call(
        subgoal_ae_kernel,
        out_shape=jax.ShapeDtypeStruct((D_IN, b_pad), x.dtype),
        grid=(grid,),
        in_specs=[
            pl.BlockSpec((D_IN, tb), lambda i: (0, i)),           # x^T batch tile
            pl.BlockSpec(w_packed.shape, lambda i: (0, 0, 0)),    # weights resident
            pl.BlockSpec(ln_packed.shape, lambda i: (0, 0)),      # LN params resident
        ],
        out_specs=pl.BlockSpec((D_IN, tb), lambda i: (0, i)),     # lane-dense store
        compiler_params=pltpu.CompilerParams(dimension_semantics=("parallel",)),
        cost_estimate=pl.CostEstimate(flops=flops,
                                      transcendentals=transcendentals,
                                      bytes_accessed=bytes_accessed),
    )(x_t, w_packed, ln_packed)
    return out_t[:, :B].T


# --------------------------------- reference ---------------------------------

def ref_forward(x, params):
    (we1, es1, eb1, we2, es2, eb2, wd1, ds1, db1, wd2, ds2, db2) = params

    def block(h, w, s, b):
        h = h @ w
        m = h.mean(-1, keepdims=True)
        v = ((h - m) ** 2).mean(-1, keepdims=True)
        h = (h - m) / jnp.sqrt(v + LN_EPS) * s + b
        return h * jax.nn.sigmoid(h)

    h = block(x, we1, es1, eb1)
    h = block(h, we2, es2, eb2)
    logits = h.reshape(x.shape[0], *BOTTLENECK)
    code = jax.nn.one_hot(jnp.argmax(logits, -1), BOTTLENECK[-1],
                          dtype=x.dtype).reshape(x.shape[0], D_BN)
    d = block(code, wd1, ds1, db1)
    d = block(d, wd2, ds2, db2)
    return d
    # TODO(synk): loss()/KL vs. uniform prior and tools.Optimizer are training-only
    # (not part of forward) and are intentionally not implemented here.


if __name__ == "__main__":
    key = jax.random.PRNGKey(0)
    kx, kp = jax.random.split(key)
    B = 20   # deliberately not a multiple of the tile -> exercises the padded tail
    x = jax.random.normal(kx, (B, D_IN), jnp.float32)
    params = init_params(kp)
    packed = pack_params(params)

    out = subgoal_autoencoder_forward(x, packed)
    out = jax.block_until_ready(out)

    ref = ref_forward(x, params)
    assert out.shape == (B, D_IN) and out.dtype == jnp.float32
    assert bool(jnp.all(jnp.isfinite(out)))
    assert bool(jnp.allclose(out, ref, atol=1e-3, rtol=1e-3))
    print("KERNEL_OK")
</pallas_src>

<mosaic_0001>
module attributes {stable_mosaic.version = 11 : i64} {
  func.func @subgoal_ae_kernel(%arg0: i32, %arg1: memref<32x128xf32, #tpu.memory_space<vmem>>, %arg2: memref<2x64x128xf32, #tpu.memory_space<vmem>>, %arg3: memref<64x8xf32, #tpu.memory_space<vmem>>, %arg4: memref<32x128xf32, #tpu.memory_space<vmem>>) attributes {dimension_semantics = [#tpu.dimension_semantics<parallel>], iteration_bounds = array<i64: 1>, scalar_prefetch = 0 : i64, scratch_operands = 0 : i64, tpu.core_type = #tpu.core_type<tc>, window_params = [{transform_indices = @transform_0, window_bounds = array<i64: 32, 128>}, {pipeline_mode = #tpu.pipeline_mode<synchronous>, transform_indices = @transform_1, window_bounds = array<i64: 2, 64, 128>}, {pipeline_mode = #tpu.pipeline_mode<synchronous>, transform_indices = @transform_2, window_bounds = array<i64: 64, 8>}, {transform_indices = @transform_3, window_bounds = array<i64: 32, 128>}]} {
    %c0 = arith.constant 0 : index
    %c0_0 = arith.constant 0 : index
    %0 = vector.load %arg1[%c0, %c0_0] : memref<32x128xf32, #tpu.memory_space<vmem>>, vector<32x128xf32>
    %c0_1 = arith.constant 0 : index
    %c0_2 = arith.constant 0 : index
    %c0_3 = arith.constant 0 : index
    %1 = vector.load %arg2[%c0_1, %c0_2, %c0_3] : memref<2x64x128xf32, #tpu.memory_space<vmem>>, vector<1x64x32xf32>
    %2 = vector.shape_cast %1 : vector<1x64x32xf32> to vector<64x32xf32>
    %c0_4 = arith.constant 0 : index
    %c0_5 = arith.constant 0 : index
    %c64 = arith.constant 64 : index
    %3 = vector.load %arg2[%c0_4, %c0_5, %c64] : memref<2x64x128xf32, #tpu.memory_space<vmem>>, vector<1x64x64xf32>
    %4 = vector.shape_cast %3 : vector<1x64x64xf32> to vector<64x64xf32>
    %c1 = arith.constant 1 : index
    %c0_6 = arith.constant 0 : index
    %c0_7 = arith.constant 0 : index
    %5 = vector.load %arg2[%c1, %c0_6, %c0_7] : memref<2x64x128xf32, #tpu.memory_space<vmem>>, vector<1x32x64xf32>
    %6 = vector.shape_cast %5 : vector<1x32x64xf32> to vector<32x64xf32>
    %c1_8 = arith.constant 1 : index
    %c0_9 = arith.constant 0 : index
    %c64_10 = arith.constant 64 : index
    %7 = vector.load %arg2[%c1_8, %c0_9, %c64_10] : memref<2x64x128xf32, #tpu.memory_space<vmem>>, vector<1x32x32xf32>
    %8 = vector.shape_cast %7 : vector<1x32x32xf32> to vector<32x32xf32>
    %c0_11 = arith.constant 0 : index
    %c0_12 = arith.constant 0 : index
    %9 = vector.load %arg3[%c0_11, %c0_12] : memref<64x8xf32, #tpu.memory_space<vmem>>, vector<64x1xf32>
    %c0_13 = arith.constant 0 : index
    %c1_14 = arith.constant 1 : index
    %10 = vector.load %arg3[%c0_13, %c1_14] : memref<64x8xf32, #tpu.memory_space<vmem>>, vector<64x1xf32>
    %c0_15 = arith.constant 0 : index
    %c2 = arith.constant 2 : index
    %11 = vector.load %arg3[%c0_15, %c2] : memref<64x8xf32, #tpu.memory_space<vmem>>, vector<64x1xf32>
    %c0_16 = arith.constant 0 : index
    %c3 = arith.constant 3 : index
    %12 = vector.load %arg3[%c0_16, %c3] : memref<64x8xf32, #tpu.memory_space<vmem>>, vector<64x1xf32>
    %c0_17 = arith.constant 0 : index
    %c4 = arith.constant 4 : index
    %13 = vector.load %arg3[%c0_17, %c4] : memref<64x8xf32, #tpu.memory_space<vmem>>, vector<32x1xf32>
    %c0_18 = arith.constant 0 : index
    %c5 = arith.constant 5 : index
    %14 = vector.load %arg3[%c0_18, %c5] : memref<64x8xf32, #tpu.memory_space<vmem>>, vector<32x1xf32>
    %c0_19 = arith.constant 0 : index
    %c6 = arith.constant 6 : index
    %15 = vector.load %arg3[%c0_19, %c6] : memref<64x8xf32, #tpu.memory_space<vmem>>, vector<32x1xf32>
    %c0_20 = arith.constant 0 : index
    %c7 = arith.constant 7 : index
    %16 = vector.load %arg3[%c0_20, %c7] : memref<64x8xf32, #tpu.memory_space<vmem>>, vector<32x1xf32>
    %cst = arith.constant dense<0.000000e+00> : vector<64x128xf32>
    %17 = tpu.matmul %2, %0, %cst {dimension_numbers = #tpu.dot_dimension_numbers<[1], [0], [0], [1], [0, 0, 1, 1], [], []>} : vector<64x32xf32>, vector<32x128xf32>, vector<64x128xf32> -> vector<64x128xf32>
    %cst_21 = arith.constant dense<0.000000e+00> : vector<128xf32>
    %18 = vector.multi_reduction <add>, %17, %cst_21 [0] : vector<64x128xf32> to vector<128xf32>
    %19 = vector.shape_cast %18 : vector<128xf32> to vector<1x128xf32>
    %20 = arith.mulf %17, %17 : vector<64x128xf32>
    %cst_22 = arith.constant dense<0.000000e+00> : vector<128xf32>
    %21 = vector.multi_reduction <add>, %20, %cst_22 [0] : vector<64x128xf32> to vector<128xf32>
    %22 = vector.shape_cast %21 : vector<128xf32> to vector<1x128xf32>
    %cst_23 = arith.constant 1.562500e-02 : f32
    %23 = vector.broadcast %cst_23 : f32 to vector<1x128xf32>
    %24 = arith.mulf %19, %23 : vector<1x128xf32>
    %cst_24 = arith.constant 1.562500e-02 : f32
    %25 = vector.broadcast %cst_24 : f32 to vector<1x128xf32>
    %26 = arith.mulf %22, %25 : vector<1x128xf32>
    %27 = arith.mulf %24, %24 : vector<1x128xf32>
    %28 = arith.subf %26, %27 : vector<1x128xf32>
    %cst_25 = arith.constant 0.000000e+00 : f32
    %29 = vector.broadcast %cst_25 : f32 to vector<1x128xf32>
    %30 = arith.maximumf %28, %29 : vector<1x128xf32>
    %31 = vector.broadcast %24 : vector<1x128xf32> to vector<64x128xf32>
    %32 = arith.subf %17, %31 : vector<64x128xf32>
    %cst_26 = arith.constant 1.000000e-03 : f32
    %33 = vector.broadcast %cst_26 : f32 to vector<1x128xf32>
    %34 = arith.addf %30, %33 : vector<1x128xf32>
    %35 = math.rsqrt %34 : vector<1x128xf32>
    %36 = vector.broadcast %35 : vector<1x128xf32> to vector<64x128xf32>
    %37 = arith.mulf %32, %36 : vector<64x128xf32>
    %38 = vector.broadcast %9 : vector<64x1xf32> to vector<64x128xf32>
    %39 = arith.mulf %37, %38 : vector<64x128xf32>
    %40 = vector.broadcast %10 : vector<64x1xf32> to vector<64x128xf32>
    %41 = arith.addf %39, %40 : vector<64x128xf32>
    %cst_27 = arith.constant 0.000000e+00 : f32
    %42 = vector.broadcast %cst_27 : f32 to vector<64x128xf32>
    %43 = arith.subf %42, %41 : vector<64x128xf32>
    %44 = math.exp %43 : vector<64x128xf32>
    %cst_28 = arith.constant 1.000000e+00 : f32
    %45 = vector.broadcast %cst_28 : f32 to vector<64x128xf32>
    %46 = arith.addf %45, %44 : vector<64x128xf32>
    %47 = tpu.reciprocal %46 : vector<64x128xf32> -> vector<64x128xf32>
    %48 = arith.mulf %41, %47 : vector<64x128xf32>
    %cst_29 = arith.constant dense<0.000000e+00> : vector<64x128xf32>
    %49 = tpu.matmul %4, %48, %cst_29 {dimension_numbers = #tpu.dot_dimension_numbers<[1], [0], [0], [1], [0, 0, 1, 1], [], []>} : vector<64x64xf32>, vector<64x128xf32>, vector<64x128xf32> -> vector<64x128xf32>
    %cst_30 = arith.constant dense<0.000000e+00> : vector<128xf32>
    %50 = vector.multi_reduction <add>, %49, %cst_30 [0] : vector<64x128xf32> to vector<128xf32>
    %51 = vector.shape_cast %50 : vector<128xf32> to vector<1x128xf32>
    %52 = arith.mulf %49, %49 : vector<64x128xf32>
    %cst_31 = arith.constant dense<0.000000e+00> : vector<128xf32>
    %53 = vector.multi_reduction <add>, %52, %cst_31 [0] : vector<64x128xf32> to vector<128xf32>
    %54 = vector.shape_cast %53 : vector<128xf32> to vector<1x128xf32>
    %cst_32 = arith.constant 1.562500e-02 : f32
    %55 = vector.broadcast %cst_32 : f32 to vector<1x128xf32>
    %56 = arith.mulf %51, %55 : vector<1x128xf32>
    %cst_33 = arith.constant 1.562500e-02 : f32
    %57 = vector.broadcast %cst_33 : f32 to vector<1x128xf32>
    %58 = arith.mulf %54, %57 : vector<1x128xf32>
    %59 = arith.mulf %56, %56 : vector<1x128xf32>
    %60 = arith.subf %58, %59 : vector<1x128xf32>
    %cst_34 = arith.constant 0.000000e+00 : f32
    %61 = vector.broadcast %cst_34 : f32 to vector<1x128xf32>
    %62 = arith.maximumf %60, %61 : vector<1x128xf32>
    %63 = vector.broadcast %56 : vector<1x128xf32> to vector<64x128xf32>
    %64 = arith.subf %49, %63 : vector<64x128xf32>
    %cst_35 = arith.constant 1.000000e-03 : f32
    %65 = vector.broadcast %cst_35 : f32 to vector<1x128xf32>
    %66 = arith.addf %62, %65 : vector<1x128xf32>
    %67 = math.rsqrt %66 : vector<1x128xf32>
    %68 = vector.broadcast %67 : vector<1x128xf32> to vector<64x128xf32>
    %69 = arith.mulf %64, %68 : vector<64x128xf32>
    %70 = vector.broadcast %11 : vector<64x1xf32> to vector<64x128xf32>
    %71 = arith.mulf %69, %70 : vector<64x128xf32>
    %72 = vector.broadcast %12 : vector<64x1xf32> to vector<64x128xf32>
    %73 = arith.addf %71, %72 : vector<64x128xf32>
    %cst_36 = arith.constant 0.000000e+00 : f32
    %74 = vector.broadcast %cst_36 : f32 to vector<64x128xf32>
    %75 = arith.subf %74, %73 : vector<64x128xf32>
    %76 = math.exp %75 : vector<64x128xf32>
    %cst_37 = arith.constant 1.000000e+00 : f32
    %77 = vector.broadcast %cst_37 : f32 to vector<64x128xf32>
    %78 = arith.addf %77, %76 : vector<64x128xf32>
    %79 = tpu.reciprocal %78 : vector<64x128xf32> -> vector<64x128xf32>
    %80 = arith.mulf %73, %79 : vector<64x128xf32>
    %81 = vector.shape_cast %80 : vector<64x128xf32> to vector<8x8x128xf32>
    %cst_38 = arith.constant dense<0xFF800000> : vector<8x128xf32>
    %82 = vector.multi_reduction <maximumf>, %81, %cst_38 [1] : vector<8x8x128xf32> to vector<8x128xf32>
    %83 = vector.shape_cast %82 : vector<8x128xf32> to vector<8x1x128xf32>
    %84 = tpu.iota {dimensions = array<i32: 1>} : vector<8x8x128xi32>
    %85 = arith.sitofp %84 : vector<8x8x128xi32> to vector<8x8x128xf32>
    %86 = vector.broadcast %83 : vector<8x1x128xf32> to vector<8x8x128xf32>
    %87 = arith.cmpf oeq, %81, %86 : vector<8x8x128xf32>
    %cst_39 = arith.constant 8.000000e+00 : f32
    %88 = vector.broadcast %cst_39 : f32 to vector<8x8x128xf32>
    %89 = arith.select %87, %85, %88 : vector<8x8x128xi1>, vector<8x8x128xf32>
    %cst_40 = arith.constant dense<0x7F800000> : vector<8x128xf32>
    %90 = vector.multi_reduction <minimumf>, %89, %cst_40 [1] : vector<8x8x128xf32> to vector<8x128xf32>
    %91 = vector.shape_cast %90 : vector<8x128xf32> to vector<8x1x128xf32>
    %92 = vector.broadcast %91 : vector<8x1x128xf32> to vector<8x8x128xf32>
    %93 = arith.cmpf oeq, %85, %92 : vector<8x8x128xf32>
    %94 = arith.extui %93 : vector<8x8x128xi1> to vector<8x8x128xi32>
    %95 = arith.sitofp %94 : vector<8x8x128xi32> to vector<8x8x128xf32>
    %96 = vector.shape_cast %95 : vector<8x8x128xf32> to vector<64x128xf32>
    %cst_41 = arith.constant dense<0.000000e+00> : vector<32x128xf32>
    %97 = tpu.matmul %6, %96, %cst_41 {dimension_numbers = #tpu.dot_dimension_numbers<[1], [0], [0], [1], [0, 0, 1, 1], [], []>} : vector<32x64xf32>, vector<64x128xf32>, vector<32x128xf32> -> vector<32x128xf32>
    %cst_42 = arith.constant dense<0.000000e+00> : vector<128xf32>
    %98 = vector.multi_reduction <add>, %97, %cst_42 [0] : vector<32x128xf32> to vector<128xf32>
    %99 = vector.shape_cast %98 : vector<128xf32> to vector<1x128xf32>
    %100 = arith.mulf %97, %97 : vector<32x128xf32>
    %cst_43 = arith.constant dense<0.000000e+00> : vector<128xf32>
    %101 = vector.multi_reduction <add>, %100, %cst_43 [0] : vector<32x128xf32> to vector<128xf32>
    %102 = vector.shape_cast %101 : vector<128xf32> to vector<1x128xf32>
    %cst_44 = arith.constant 3.125000e-02 : f32
    %103 = vector.broadcast %cst_44 : f32 to vector<1x128xf32>
    %104 = arith.mulf %99, %103 : vector<1x128xf32>
    %cst_45 = arith.constant 3.125000e-02 : f32
    %105 = vector.broadcast %cst_45 : f32 to vector<1x128xf32>
    %106 = arith.mulf %102, %105 : vector<1x128xf32>
    %107 = arith.mulf %104, %104 : vector<1x128xf32>
    %108 = arith.subf %106, %107 : vector<1x128xf32>
    %cst_46 = arith.constant 0.000000e+00 : f32
    %109 = vector.broadcast %cst_46 : f32 to vector<1x128xf32>
    %110 = arith.maximumf %108, %109 : vector<1x128xf32>
    %111 = vector.broadcast %104 : vector<1x128xf32> to vector<32x128xf32>
    %112 = arith.subf %97, %111 : vector<32x128xf32>
    %cst_47 = arith.constant 1.000000e-03 : f32
    %113 = vector.broadcast %cst_47 : f32 to vector<1x128xf32>
    %114 = arith.addf %110, %113 : vector<1x128xf32>
    %115 = math.rsqrt %114 : vector<1x128xf32>
    %116 = vector.broadcast %115 : vector<1x128xf32> to vector<32x128xf32>
    %117 = arith.mulf %112, %116 : vector<32x128xf32>
    %118 = vector.broadcast %13 : vector<32x1xf32> to vector<32x128xf32>
    %119 = arith.mulf %117, %118 : vector<32x128xf32>
    %120 = vector.broadcast %14 : vector<32x1xf32> to vector<32x128xf32>
    %121 = arith.addf %119, %120 : vector<32x128xf32>
    %cst_48 = arith.constant 0.000000e+00 : f32
    %122 = vector.broadcast %cst_48 : f32 to vector<32x128xf32>
    %123 = arith.subf %122, %121 : vector<32x128xf32>
    %124 = math.exp %123 : vector<32x128xf32>
    %cst_49 = arith.constant 1.000000e+00 : f32
    %125 = vector.broadcast %cst_49 : f32 to vector<32x128xf32>
    %126 = arith.addf %125, %124 : vector<32x128xf32>
    %127 = tpu.reciprocal %126 : vector<32x128xf32> -> vector<32x128xf32>
    %128 = arith.mulf %121, %127 : vector<32x128xf32>
    %cst_50 = arith.constant dense<0.000000e+00> : vector<32x128xf32>
    %129 = tpu.matmul %8, %128, %cst_50 {dimension_numbers = #tpu.dot_dimension_numbers<[1], [0], [0], [1], [0, 0, 1, 1], [], []>} : vector<32x32xf32>, vector<32x128xf32>, vector<32x128xf32> -> vector<32x128xf32>
    %cst_51 = arith.constant dense<0.000000e+00> : vector<128xf32>
    %130 = vector.multi_reduction <add>, %129, %cst_51 [0] : vector<32x128xf32> to vector<128xf32>
    %131 = vector.shape_cast %130 : vector<128xf32> to vector<1x128xf32>
    %132 = arith.mulf %129, %129 : vector<32x128xf32>
    %cst_52 = arith.constant dense<0.000000e+00> : vector<128xf32>
    %133 = vector.multi_reduction <add>, %132, %cst_52 [0] : vector<32x128xf32> to vector<128xf32>
    %134 = vector.shape_cast %133 : vector<128xf32> to vector<1x128xf32>
    %cst_53 = arith.constant 3.125000e-02 : f32
    %135 = vector.broadcast %cst_53 : f32 to vector<1x128xf32>
    %136 = arith.mulf %131, %135 : vector<1x128xf32>
    %cst_54 = arith.constant 3.125000e-02 : f32
    %137 = vector.broadcast %cst_54 : f32 to vector<1x128xf32>
    %138 = arith.mulf %134, %137 : vector<1x128xf32>
    %139 = arith.mulf %136, %136 : vector<1x128xf32>
    %140 = arith.subf %138, %139 : vector<1x128xf32>
    %cst_55 = arith.constant 0.000000e+00 : f32
    %141 = vector.broadcast %cst_55 : f32 to vector<1x128xf32>
    %142 = arith.maximumf %140, %141 : vector<1x128xf32>
    %143 = vector.broadcast %136 : vector<1x128xf32> to vector<32x128xf32>
    %144 = arith.subf %129, %143 : vector<32x128xf32>
    %cst_56 = arith.constant 1.000000e-03 : f32
    %145 = vector.broadcast %cst_56 : f32 to vector<1x128xf32>
    %146 = arith.addf %142, %145 : vector<1x128xf32>
    %147 = math.rsqrt %146 : vector<1x128xf32>
    %148 = vector.broadcast %147 : vector<1x128xf32> to vector<32x128xf32>
    %149 = arith.mulf %144, %148 : vector<32x128xf32>
    %150 = vector.broadcast %15 : vector<32x1xf32> to vector<32x128xf32>
    %151 = arith.mulf %149, %150 : vector<32x128xf32>
    %152 = vector.broadcast %16 : vector<32x1xf32> to vector<32x128xf32>
    %153 = arith.addf %151, %152 : vector<32x128xf32>
    %cst_57 = arith.constant 0.000000e+00 : f32
    %154 = vector.broadcast %cst_57 : f32 to vector<32x128xf32>
    %155 = arith.subf %154, %153 : vector<32x128xf32>
    %156 = math.exp %155 : vector<32x128xf32>
    %cst_58 = arith.constant 1.000000e+00 : f32
    %157 = vector.broadcast %cst_58 : f32 to vector<32x128xf32>
    %158 = arith.addf %157, %156 : vector<32x128xf32>
    %159 = tpu.reciprocal %158 : vector<32x128xf32> -> vector<32x128xf32>
    %160 = arith.mulf %153, %159 : vector<32x128xf32>
    %c0_59 = arith.constant 0 : index
    %c0_60 = arith.constant 0 : index
    %161 = vector.load %arg4[%c0_59, %c0_60] : memref<32x128xf32, #tpu.memory_space<vmem>>, vector<32x128xf32>
    tpu.vector_store %arg4[%c0_59, %c0_60], %160 {strides = array<i32>} : memref<32x128xf32, #tpu.memory_space<vmem>>, vector<32x128xf32>,
    return
  }
  func.func @transform_0(%arg0: i32) -> (i32, i32) {
    %c0_i32 = arith.constant 0 : i32
    %c0_i32_0 = arith.constant 0 : i32
    return %c0_i32, %arg0 : i32, i32
  }
  func.func @transform_1(%arg0: i32) -> (i32, i32, i32) {
    %c0_i32 = arith.constant 0 : i32
    %c0_i32_0 = arith.constant 0 : i32
    %c0_i32_1 = arith.constant 0 : i32
    %c0_i32_2 = arith.constant 0 : i32
    return %c0_i32, %c0_i32_0, %c0_i32_1 : i32, i32, i32
  }
  func.func @transform_2(%arg0: i32) -> (i32, i32) {
    %c0_i32 = arith.constant 0 : i32
    %c0_i32_0 = arith.constant 0 : i32
    %c0_i32_1 = arith.constant 0 : i32
    return %c0_i32, %c0_i32_0 : i32, i32
  }
  func.func @transform_3(%arg0: i32) -> (i32, i32) {
    %c0_i32 = arith.constant 0 : i32
    %c0_i32_0 = arith.constant 0 : i32
    return %c0_i32, %arg0 : i32, i32
  }
}

</mosaic_0001>

<bundles_post_ra>
// kernel: tpu_custom_call.1
= control target key start
LH: loop header
LB: loop body
LE: loop exit
PB: predicated region body
PF: predicated region fallthrough
CT: control target
= control target key end

     0   :  { %8 = vsyncpa [#allocation3], 0  ;;  %s2138_s0 = inlined_call_operand.vmem [shape: f32[32,128], index: 0, kind: input, shape index: {}]   ;;  %s2139_s1 = inlined_call_operand.hbm [shape: f32[2,64,128], index: 1, kind: input, shape index: {}]   ;;  %s2140_s2 = inlined_call_operand.vmem [shape: f32[64,8], index: 2, kind: input, shape index: {}]   ;;  %s2141_s3 = inlined_call_operand.hbm [shape: f32[32,128], index: 3, kind: output, shape index: {}]  }
   0x1   :  { %9 = vsyncpa [#allocation4], 0  ;;  %s1686_s12 = smov [#allocation2]   ;;  %s1638_s16 = scalar_lea.hbm %s2139_s1, 2048 }
   0x2   :  { %s17_s13 = sshll.u32 %s1686_s12, 4  ;;  %p1639_p0 = scmp.ne.s32.totalorder %s2139_s1, %s1638_s16  ;;  %s18_s13 = int_to_ptr.vmem [resolvable:$true] %s17_s13 }
   0x3   :  { %p1642_p1 = scmp.lt.u32.totalorder %s1638_s16, %s2139_s1 }
   0x5   :  { %p1644_p2 = pnand %p1642_p1, %p1639_p0 }
   0x7   :  { %1647 = shalt.err (!%p1644_p2)
}
   0x8   :  { %s1648_s21 = scalar_lea.vmem %s18_s13, 2048  ;;  %p1653_p4 = scmp.lt.s32.totalorder %s18_s13, %s18_s13 }
   0x9   :  { %p1649_p3 = scmp.ne.s32.totalorder %s18_s13, %s1648_s21  ;;  %p1654_p5 = scmp.lt.s32.totalorder %s1648_s21, %s1648_s21 }
   0xb   :  { %p1655_p6 = por %p1654_p5, %p1653_p4 }
   0xd   :  { %p1656_p7 = pnand %p1655_p6, %p1649_p3 }
   0xf   :  { %1659 = shalt.err (!%p1656_p7)
}
  0x10   :  { %s1687_s22 = smov 128   ;;  %s1688_s23 = smov 8  }
  0x11   :  { %23 = dma.hbm_to_vmem [thread:$0]  %s2139_s1, 2048, %s18_s13, [#allocation3], %s1687_s22, %s1687_s22, %s1688_s23  }
  0x12   :  { %1682 = dma.done.wait [#allocation3], 2048  }
  0x13   :  { %1683 = vsyncadd [#allocation3], 4294965248  ;;  %v1689_v0 = vmov 1   ;;  %v1690_v1 = vmov 0   ;;  %vm54_vm0 = vcmask 261120   ;;  %v29_v2 = vld [vmem:[%s2138_s0] sm:$0xff] }
  0x14   :  { %1499 = vset.pattern.permute.xlu1 %v1689_v0  ;;  %1498 = vset.pattern.permute.xlu0 %v1690_v1  ;;  %v30_v3 = vld [vmem:[%s2138_s0 + $0x8] sm:$0xff]  ;;  %v31_v4 = vld [vmem:[%s2138_s0 + $0x10] sm:$0xff]  ;;  %v32_v6 = vld [vmem:[%s2138_s0 + $0x18] sm:$0xff]  ;;  %s1691_s21 = smov 64   ;;  %vm393_vm1 = vcmask 523264   ;;  %v1692_v34 = vmov 2  }
  0x15   :  { %v1432_v5 = vpack.c.bf16 %v30_v3, %v29_v2  ;;  %v33_v7 = vld [vmem:[#allocation2] sm:$0xff]  ;;  %v1436_v8 = vpack.c.bf16 %v32_v6, %v31_v4  ;;  %v1758_v10 = vld [vmem:[%s2140_s2 + $0x8] sm:$0xff]  ;;  %v1764_v12 = vld [vmem:[%s2140_s2 + $0x10] sm:$0xff]  ;;  %v1693_v35 = vmov 3  }
  0x16   :  { %1356 = vmatprep.mubr.msk.f32.mxu0 %vm54_vm0, %v33_v7  ;;  %v1752_v9 = vld [vmem:[%s2140_s2] sm:$0xff]  ;;  %v34_v11 = vld [vmem:[#allocation2 + $0x8] sm:$0xff]  ;;  %v35_v13 = vld [vmem:[#allocation2 + $0x10] sm:$0xff] }
  0x17   :  { %1433 = vmatprep.subr.bf16.mxu0 %v1432_v5  ;;  %290 = vperm.xlu1 %1499, %v1752_v9   ;;  %v1772_v14 = vld [vmem:[%s2140_s2 + $0x18] sm:$0xff]  ;;  %v37_v16 = vld [vmem:[#allocation2 + $0x20] sm:$0xff]  ;;  %v38_v17 = vld [vmem:[#allocation2 + $0x28] sm:$0xff] }
  0x18   :  { %1435 = vmatpush3.bf16.msra.mxu0 %v1432_v5  ;;  %243 = vperm.xlu0 %1498, %v1752_v9   ;;  %v36_v15 = vld [vmem:[#allocation2 + $0x18] sm:$0xff]  ;;  %v39_v18 = vld [vmem:[#allocation2 + $0x30] sm:$0xff]  ;;  %v1788_v20 = vld [vmem:[%s2140_s2 + $0x20] sm:$0xff] }
  0x19   :  { %1437 = vmatprep.subr.bf16.mxu0 %v1436_v8  ;;  %v40_v19 = vld [vmem:[#allocation2 + $0x38] sm:$0xff]  ;;  %v1793_v21 = vld [vmem:[%s2140_s2 + $0x28] sm:$0xff]  ;;  %v1801_v22 = vld [vmem:[%s2140_s2 + $0x30] sm:$0xff] }
  0x1a   :  { %v1812_v23 = vld [vmem:[%s2140_s2 + $0x38] sm:$0xff] }
  0x1b   :  { %294 = vperm.xlu1 %1499, %v1758_v10  }
  0x1c   :  { %1439 = vmatpush3.bf16.msra.mxu0 %v1436_v8  ;;  %1501 = vset.pattern.permute.xlu0 %v1689_v0 }
  0x1d   :  { %298 = vperm.xlu0 %1501, %v1764_v12  }
  0x1f   :  { %1357 = vmatmul.mubr.msk.f32.vlgmr.msra.gmra.mrb[0].mxu0 %vm54_vm0, %v34_v11  ;;  %1500 = vset.pattern.permute.xlu1 %v1690_v1 }
  0x20   :  { %1359 = vmatprep.mubr.msk.f32.mxu0 %vm54_vm0, %v35_v13  ;;  %258 = vperm.xlu1 %1500, %v1772_v14  }
  0x21   :  { %1502 = vset.pattern.permute.xlu0 %v1690_v1 }
  0x22   :  { %248 = vperm.xlu0 %1502, %v1758_v10  }
  0x23   :  { %1360 = vmatmul.mubr.msk.f32.gmra.mrb[2].mxu0 %vm54_vm0, %v36_v15 }
  0x24   :  { %1362 = vmatprep.mubr.msk.f32.mxu0 %vm54_vm0, %v37_v16  ;;  %1503 = vset.pattern.permute.xlu1 %v1689_v0 }
  0x25   :  { %302 = vperm.xlu1 %1503, %v1772_v14  }
  0x26   :  { %253 = vperm.xlu0 %1502, %v1764_v12  }
  0x27   :  { %1363 = vmatmul.mubr.msk.f32.gmra.mrb[4].mxu0 %vm54_vm0, %v38_v17 }
  0x28   :  { %1365 = vmatprep.mubr.msk.f32.mxu0 %vm54_vm0, %v39_v18 }
  0x29   :  { %1504 = vset.pattern.permute.xlu1 %v1690_v1 }
  0x2a   :  { %263 = vperm.xlu1 %1504, %v1788_v20   ;;  %268 = vperm.xlu0 %1502, %v1793_v21  }
  0x2b   :  { %1366 = vmatmul.mubr.msk.f32.gmra.mrb[6].mxu0 %vm54_vm0, %v40_v19 }
  0x2e   :  { %1505 = vset.pattern.permute.xlu1 %v1689_v0  ;;  %273 = vperm.xlu0 %1502, %v1801_v22  }
  0x2f   :  { %306 = vperm.xlu1 %1505, %v1788_v20  }
  0x32   :  { %1507 = vset.pattern.permute.xlu0 %v1689_v0 }
  0x33   :  { %310 = vperm.xlu1 %1505, %v1793_v21   ;;  %314 = vperm.xlu0 %1507, %v1801_v22  }
  0x37   :  { %1506 = vset.pattern.permute.xlu1 %v1690_v1  ;;  %379 = vrot.lane.b32.xlu0 %v34_v11, %s1691_s21 }
  0x38   :  { %278 = vperm.xlu1 %1506, %v1812_v23   ;;  %1512 = vset.pattern.permute.xlu0 %v1693_v35 }
  0x3b   :  { %383 = vrot.lane.b32.xlu0 %v36_v15, %s1691_s21 }
  0x3c   :  { %1508 = vset.pattern.permute.xlu1 %v1689_v0 }
  0x3d   :  { %318 = vperm.xlu1 %1508, %v1812_v23  }
  0x3f   :  { %387 = vrot.lane.b32.xlu0 %v38_v17, %s1691_s21 }
  0x41   :  { %377 = vrot.lane.b32.xlu1 %v33_v7, %s1691_s21 }
  0x42   :  { %1509 = vset.pattern.permute.xlu1 %v1692_v34 }
  0x43   :  { %391 = vrot.lane.b32.xlu0 %v40_v19, %s1691_s21 }
  0x45   :  { %381 = vrot.lane.b32.xlu1 %v35_v13, %s1691_s21 }
  0x47   :  { %621 = vperm.xlu0 %1512, %v1764_v12  }
  0x49   :  { %385 = vrot.lane.b32.xlu1 %v37_v16, %s1691_s21 }
  0x4b   :  { %1513 = vset.pattern.permute.xlu0 %v1692_v34 }
  0x4c   :  { %577 = vperm.xlu0 %1513, %v1758_v10  }
  0x4d   :  { %389 = vrot.lane.b32.xlu1 %v39_v18, %s1691_s21 }
  0x50   :  { %581 = vperm.xlu0 %1513, %v1764_v12  }
  0x51   :  { %573 = vperm.xlu1 %1509, %v1752_v9  }
  0x54   :  { %593 = vperm.xlu0 %1513, %v1793_v21  }
  0x55   :  { %1510 = vset.pattern.permute.xlu1 %v1693_v35 }
  0x56   :  { %613 = vperm.xlu1 %1510, %v1752_v9  }
  0x58   :  { %597 = vperm.xlu0 %1513, %v1801_v22  }
  0x5a   :  { %617 = vperm.xlu1 %1510, %v1758_v10  }
  0x5c   :  { %1518 = vset.pattern.permute.xlu0 %v1693_v35 }
  0x5d   :  { %637 = vperm.xlu0 %1518, %v1801_v22  }
  0x5e   :  { %1511 = vset.pattern.permute.xlu1 %v1692_v34 }
  0x5f   :  { %585 = vperm.xlu1 %1511, %v1772_v14  }
  0x63   :  { %1514 = vset.pattern.permute.xlu1 %v1693_v35 }
  0x64   :  { %625 = vperm.xlu1 %1514, %v1772_v14  }
  0x68   :  { %1515 = vset.pattern.permute.xlu1 %v1692_v34 }
  0x69   :  { %589 = vperm.xlu1 %1515, %v1788_v20  }
  0x6d   :  { %1516 = vset.pattern.permute.xlu1 %v1693_v35 }
  0x6e   :  { %629 = vperm.xlu1 %1516, %v1788_v20  }
  0x72   :  { %633 = vperm.xlu1 %1516, %v1793_v21  }
  0x76   :  { %1517 = vset.pattern.permute.xlu1 %v1692_v34 }
  0x77   :  { %601 = vperm.xlu1 %1517, %v1812_v23  }
  0x7b   :  { %1519 = vset.pattern.permute.xlu1 %v1693_v35 }
  0x7c   :  { %641 = vperm.xlu1 %1519, %v1812_v23  }
  0x96   :  { %v1825_v24 = vpop.permute.xlu1 %290 }
  0x97   :  { %v244_v1 = vpop.permute.xlu0 %243 }
  0x9a   :  { %v1827_v25 = vpop.permute.xlu1 %294 }
  0x9c   :  { %v299_v8 = vpop.permute.xlu0 %298 }
  0x9f   :  { %v1829_v26 = vpop.permute.xlu1 %258 }
  0xa1   :  { %v249_v19 = vpop.permute.xlu0 %248 }
  0xa4   :  { %v1831_v27 = vpop.permute.xlu1 %302 }
  0xa9   :  { %v1833_v28 = vpop.permute.xlu1 %263 }
  0xae   :  { %v1835_v29 = vpop.permute.xlu1 %306 }
  0xb2   :  { %v1837_v30 = vpop.permute.xlu1 %310 }
  0xb7   :  { %v1839_v31 = vpop.permute.xlu1 %278 }
  0xbc   :  { %v1841_v32 = vpop.permute.xlu1 %318 }
  0xc0   :  { %v378_v33 = vpop.permute.xlu1 %377 }
  0xc1   :  { %1384 = vmatprep.mubr.msk.f32.mxu1 %vm393_vm1, %v378_v33 }
  0xf2   :  { %v1852_v36 = vpop.f32.mrb[0].mxu0 }
  0xf3   :  { %v198_v37 = vmul.f32 %v1852_v36, %v1852_v36  ;;  %v1856_v38 = vpop.f32.mrb[1].mxu0 }
  0xf4   :  { %v184_v39 = vadd.f32 %v1852_v36, %v1856_v38  ;;  %v197_v40 = vmul.f32 %v1856_v38, %v1856_v38 }
  0xf6   :  { %v205_v41 = vadd.f32 %v198_v37, %v197_v40  ;;  %v1864_v42 = vpop.f32.mrb[2].mxu0 }
  0xf7   :  { %v1866_v43 = vpop.f32.mrb[3].mxu0  ;;  %v200_v46 = vmul.f32 %v1864_v42, %v1864_v42 }
  0xf8   :  { %v185_v44 = vadd.f32 %v184_v39, %v1866_v43  ;;  %v199_v45 = vmul.f32 %v1866_v43, %v1866_v43 }
  0xfa   :  { %v206_v47 = vadd.f32 %v205_v41, %v199_v45  ;;  %v1876_v48 = vpop.f32.mrb[4].mxu0  ;;  %v186_v49 = vadd.f32 %v1864_v42, %v185_v44 }
  0xfb   :  { %v1879_v50 = vpop.f32.mrb[5].mxu0  ;;  %v202_v54 = vmul.f32 %v1876_v48, %v1876_v48 }
  0xfc   :  { %v187_v51 = vadd.f32 %v186_v49, %v1879_v50  ;;  %v201_v52 = vmul.f32 %v1879_v50, %v1879_v50  ;;  %v207_v53 = vadd.f32 %v206_v47, %v200_v46  ;;  %v254_v49 = vpop.permute.xlu0 %253 }
  0xfe   :  { %v208_v55 = vadd.f32 %v207_v53, %v201_v52  ;;  %v1888_v56 = vpop.f32.mrb[6].mxu0  ;;  %v188_v57 = vadd.f32 %v1876_v48, %v187_v51 }
  0xff   :  { %v175_v58 = vpop.f32.mrb[7].mxu0  ;;  %v204_v62 = vmul.f32 %v1888_v56, %v1888_v56 }
 0x100   :  { %v189_v59 = vadd.f32 %v188_v57, %v175_v58  ;;  %v203_v60 = vmul.f32 %v175_v58, %v175_v58  ;;  %v209_v61 = vadd.f32 %v208_v55, %v202_v54 }
 0x102   :  { %v190_v63 = vadd.f32 %v1888_v56, %v189_v59  ;;  %v210_v0 = vadd.f32 %v209_v61, %v203_v60 }
 0x104   :  { %v191_v2 = vrot.slane %v190_v63, 4  ;;  %v211_v3 = vadd.f32 %v210_v0, %v204_v62 }
 0x106   :  { %v192_v4 = vadd.f32 %v191_v2, %v190_v63  ;;  %v212_v5 = vrot.slane %v211_v3, 4 }
 0x108   :  { %v193_v6 = vrot.slane %v192_v4, 2  ;;  %v213_v7 = vadd.f32 %v212_v5, %v211_v3 }
 0x10a   :  { %v194_v11 = vadd.f32 %v193_v6, %v192_v4  ;;  %v214_v13 = vrot.slane %v213_v7, 2 }
 0x10c   :  { %v195_v15 = vrot.slane %v194_v11, 1  ;;  %v215_v16 = vadd.f32 %v214_v13, %v213_v7 }
 0x10e   :  { %v196_v17 = vadd.f32 %v195_v15, %v194_v11  ;;  %v216_v18 = vrot.slane %v215_v16, 1 }
 0x110   :  { %v217_v22 = vadd.f32 %v216_v18, %v215_v16  ;;  %v218_v33 = vmul.f32 0.015625, %v196_v17 }
 0x112   :  { %v219_v37 = vmul.f32 0.015625, %v217_v22  ;;  %v220_v39 = vmul.f32 %v218_v33, %v218_v33  ;;  %v229_v40 = vsub.f32 %v175_v58, %v218_v33  ;;  %v223_v20 = vsub.f32 %v1856_v38, %v218_v33 }
 0x113   :  { %v226_v41 = vsub.f32 %v1864_v42, %v218_v33  ;;  %v224_v44 = vsub.f32 %v1852_v36, %v218_v33  ;;  %v227_v21 = vsub.f32 %v1879_v50, %v218_v33  ;;  %v225_v45 = vsub.f32 %v1866_v43, %v218_v33  ;;  %v269_v42 = vpop.permute.xlu0 %268 }
 0x114   :  { %v221_v46 = vsub.f32 %v219_v37, %v220_v39  ;;  %v228_v47 = vsub.f32 %v1876_v48, %v218_v33  ;;  %v230_v34 = vsub.f32 %v1888_v56, %v218_v33 }
 0x116   :  { %v222_v51 = vmax.f32 %v221_v46, 0.0 }
 0x117   :  { %v274_v52 = vpop.permute.xlu0 %273 }
 0x118   :  { %v231_v38 = vadd.f32 0.001, %v222_v51 }
 0x11a   :  { %1530 = vrsqrt.f32 %v231_v38 }
 0x11b   :  { %v315_v23 = vpop.permute.xlu0 %314 }
 0x124   :  { %v1531_v36 = vpop.eup %1530 }
 0x125   :  { %v233_v53 = vmul.f32 %v1531_v36, %v223_v20  ;;  %v236_v50 = vmul.f32 %v1531_v36, %v226_v41  ;;  %v234_v54 = vmul.f32 %v1531_v36, %v224_v44  ;;  %v237_v43 = vmul.f32 %v1531_v36, %v227_v21 }
 0x126   :  { %v235_v55 = vmul.f32 %v1531_v36, %v225_v45  ;;  %v238_v57 = vmul.f32 %v1531_v36, %v228_v47  ;;  %v239_v48 = vmul.f32 %v1531_v36, %v229_v40  ;;  %v240_v58 = vmul.f32 %v1531_v36, %v230_v34 }
 0x127   :  { %v281_v56 = vmul.f32 %v244_v1, %v233_v53  ;;  %v284_v59 = vmul.f32 %v1829_v26, %v236_v50  ;;  %v282_v35 = vmul.f32 %v249_v19, %v234_v54  ;;  %v285_v60 = vmul.f32 %v1833_v28, %v237_v43 }
 0x128   :  { %v283_v61 = vmul.f32 %v254_v49, %v235_v55  ;;  %v286_v62 = vmul.f32 %v269_v42, %v238_v57  ;;  %v287_v63 = vmul.f32 %v274_v52, %v239_v48  ;;  %v288_v0 = vmul.f32 %v1839_v31, %v240_v58 }
 0x129   :  { %v321_v2 = vadd.f32 %v1825_v24, %v281_v56  ;;  %v324_v3 = vadd.f32 %v1831_v27, %v284_v59  ;;  %v322_v4 = vadd.f32 %v1827_v25, %v282_v35  ;;  %v1920_v5 = vadd.f32 %v1835_v29, %v285_v60 }
 0x12a   :  { %v323_v1 = vadd.f32 %v299_v8, %v283_v61  ;;  %v1923_v26 = vadd.f32 %v1837_v30, %v286_v62  ;;  %v1926_v28 = vadd.f32 %v1841_v32, %v288_v0  ;;  %v1928_v6 = vadd.f32 %v315_v23, %v287_v63 }
 0x12b   :  { %v329_v7 = vsub.f32 0.0, %v321_v2  ;;  %v332_v31 = vsub.f32 0.0, %v324_v3  ;;  %v330_v11 = vsub.f32 0.0, %v322_v4  ;;  %v333_v24 = vsub.f32 0.0, %v1920_v5 }
 0x12c   :  { %v331_v27 = vsub.f32 0.0, %v323_v1  ;;  %v334_v25 = vsub.f32 0.0, %v1923_v26  ;;  %v336_v29 = vsub.f32 0.0, %v1926_v28  ;;  %v335_v16 = vsub.f32 0.0, %v1928_v6 }
 0x12d   :  { %v337_v13 = vmul.f32 1.442695, %v329_v7  ;;  %v343_v8 = vmul.f32 1.442695, %v332_v31  ;;  %v339_v15 = vmul.f32 1.442695, %v330_v11 }
 0x12e   :  { %v341_v30 = vmul.f32 1.442695, %v331_v27  ;;  %v345_v32 = vmul.f32 1.442695, %v333_v24  ;;  %v347_v17 = vmul.f32 1.442695, %v334_v25 }
 0x12f   :  { %1532 = vpow2.f32 %v337_v13  ;;  %v351_v18 = vmul.f32 1.442695, %v336_v29  ;;  %v349_v19 = vmul.f32 1.442695, %v335_v16  ;;  %v1957_v25 = vld [vmem:[#allocation2 + $0x40] sm:$0xff] }
 0x130   :  { %1534 = vpow2.f32 %v343_v8  ;;  %1412 = vmatprep.mubr.msk.f32.mxu0 %vm393_vm1, %v1957_v25 }
 0x131   :  { %1536 = vpow2.f32 %v339_v15 }
 0x132   :  { %1538 = vpow2.f32 %v341_v30 }
 0x133   :  { %1540 = vpow2.f32 %v345_v32 }
 0x134   :  { %1542 = vpow2.f32 %v347_v17 }
 0x135   :  { %1544 = vpow2.f32 %v351_v18 }
 0x136   :  { %1546 = vpow2.f32 %v349_v19 }
 0x139   :  { %v1533_v22 = vpop.eup %1532 }
 0x13a   :  { %v1535_v33 = vpop.eup %1534  ;;  %v353_v37 = vadd.f32 1.0, %v1533_v22 }
 0x13b   :  { %v1537_v39 = vpop.eup %1536  ;;  %v356_v40 = vadd.f32 1.0, %v1535_v33 }
 0x13c   :  { %v1539_v20 = vpop.eup %1538  ;;  %1548 = vrcp.f32 %v353_v37  ;;  %v354_v41 = vadd.f32 1.0, %v1537_v39 }
 0x13d   :  { %v1541_v44 = vpop.eup %1540  ;;  %1550 = vrcp.f32 %v356_v40  ;;  %v355_v21 = vadd.f32 1.0, %v1539_v20  ;;  %v1694_v20 = vmov 4  }
 0x13e   :  { %v1543_v45 = vpop.eup %1542  ;;  %1552 = vrcp.f32 %v354_v41  ;;  %v357_v46 = vadd.f32 1.0, %v1541_v44  ;;  %1520 = vset.pattern.permute.xlu1 %v1694_v20  ;;  %1521 = vset.pattern.permute.xlu0 %v1694_v20 }
 0x13f   :  { %v1545_v47 = vpop.eup %1544  ;;  %1554 = vrcp.f32 %v355_v21  ;;  %v358_v34 = vadd.f32 1.0, %v1543_v45  ;;  %974 = vperm.xlu1 %1520, %v1752_v9   ;;  %978 = vperm.xlu0 %1521, %v1758_v10  }
 0x140   :  { %v1547_v49 = vpop.eup %1546  ;;  %1556 = vrcp.f32 %v357_v46  ;;  %v360_v51 = vadd.f32 1.0, %v1545_v47 }
 0x141   :  { %1558 = vrcp.f32 %v358_v34  ;;  %v359_v38 = vadd.f32 1.0, %v1547_v49 }
 0x142   :  { %1560 = vrcp.f32 %v360_v51 }
 0x143   :  { %1562 = vrcp.f32 %v359_v38  ;;  %982 = vperm.xlu0 %1521, %v1764_v12  }
 0x146   :  { %v1549_v42 = vpop.eup %1548 }
 0x147   :  { %v1551_v52 = vpop.eup %1550  ;;  %v369_v36 = vmul.f32 %v1549_v42, %v321_v2  ;;  %v380_v2 = vpop.permute.xlu0 %379 }
 0x148   :  { %v1553_v53 = vpop.eup %1552  ;;  %v372_v50 = vmul.f32 %v1551_v52, %v324_v3  ;;  %v382_v3 = vpop.permute.xlu1 %381  ;;  %v1695_v52 = vmov 5  }
 0x149   :  { %v1555_v54 = vpop.eup %1554  ;;  %v370_v43 = vmul.f32 %v1553_v53, %v322_v4  ;;  %1522 = vset.pattern.permute.xlu1 %v1695_v52  ;;  %1524 = vset.pattern.permute.xlu0 %v1695_v52 }
 0x14a   :  { %v1557_v55 = vpop.eup %1556  ;;  %v371_v57 = vmul.f32 %v1555_v54, %v323_v1  ;;  %994 = vperm.xlu1 %1522, %v1752_v9   ;;  %1002 = vperm.xlu0 %1524, %v1764_v12   ;;  %v2010_v12 = vld [vmem:[#allocation2 + $0x58] sm:$0xff] }
 0x14b   :  { %v1559_v48 = vpop.eup %1558  ;;  %v373_v58 = vmul.f32 %v1557_v55, %v1920_v5  ;;  %v1440_v56 = vpack.c.bf16 %v370_v43, %v369_v36  ;;  %v384_v4 = vpop.permute.xlu0 %383 }
 0x14c   :  { %v1561_v59 = vpop.eup %1560  ;;  %v374_v35 = vmul.f32 %v1559_v48, %v1923_v26  ;;  %v1444_v60 = vpack.c.bf16 %v372_v50, %v371_v57  ;;  %v386_v5 = vpop.permute.xlu1 %385 }
 0x14d   :  { %v1563_v23 = vpop.eup %1562  ;;  %v376_v61 = vmul.f32 %v1561_v59, %v1926_v28  ;;  %1441 = vmatprep.subr.bf16.mxu1 %v1440_v56 }
 0x14e   :  { %v375_v62 = vmul.f32 %v1563_v23, %v1928_v6  ;;  %1443 = vmatpush3.bf16.msra.mxu1 %v1440_v56  ;;  %v1448_v63 = vpack.c.bf16 %v374_v35, %v373_v58  ;;  %998 = vperm.xlu1 %1522, %v1758_v10   ;;  %v2005_v35 = vld [vmem:[#allocation2 + $0x48] sm:$0xff] }
 0x14f   :  { %1445 = vmatprep.subr.bf16.mxu1 %v1444_v60  ;;  %v388_v1 = vpop.permute.xlu0 %387  ;;  %1039 = vrot.lane.b32.xlu0 %v2005_v35, %s1691_s21 }
 0x150   :  { %v1452_v0 = vpack.c.bf16 %v376_v61, %v375_v62  ;;  %v390_v26 = vpop.permute.xlu1 %389 }
 0x152   :  { %1447 = vmatpush3.bf16.msra.mxu1 %v1444_v60  ;;  %1523 = vset.pattern.permute.xlu1 %v1694_v20 }
 0x153   :  { %1449 = vmatprep.subr.bf16.mxu1 %v1448_v63  ;;  %v392_v28 = vpop.permute.xlu0 %391  ;;  %986 = vperm.xlu1 %1523, %v1772_v14  }
 0x154   :  { %v1945_v6 = vpop.permute.xlu1 %573  ;;  %1043 = vrot.lane.b32.xlu0 %v2010_v12, %s1691_s21 }
 0x156   :  { %1451 = vmatpush3.bf16.msra.mxu1 %v1448_v63 }
 0x157   :  { %1453 = vmatprep.subr.bf16.mxu1 %v1452_v0  ;;  %v2003_v48 = vpop.permute.xlu0 %621  ;;  %1525 = vset.pattern.permute.xlu1 %v1695_v52 }
 0x158   :  { %v1965_v15 = vpop.permute.xlu1 %613  ;;  %1006 = vperm.xlu1 %1525, %v1772_v14  }
 0x15a   :  { %1455 = vmatpush3.bf16.msra.mxu1 %v1452_v0 }
 0x15b   :  { %v578_v61 = vpop.permute.xlu0 %577 }
 0x15c   :  { %v1980_v40 = vpop.permute.xlu1 %617  ;;  %1037 = vrot.lane.b32.xlu1 %v1957_v25, %s1691_s21 }
 0x15d   :  { %1385 = vmatmul.mubr.msk.f32.vlgmr.msra.gmra.mrb[0].mxu1 %vm393_vm1, %v380_v2 }
 0x15e   :  { %1387 = vmatprep.mubr.msk.f32.mxu1 %vm393_vm1, %v382_v3 }
 0x15f   :  { %v582_v14 = vpop.permute.xlu0 %581 }
 0x160   :  { %v1998_v36 = vpop.permute.xlu1 %585 }
 0x161   :  { %1388 = vmatmul.mubr.msk.f32.gmra.mrb[2].mxu1 %vm393_vm1, %v384_v4 }
 0x162   :  { %1390 = vmatprep.mubr.msk.f32.mxu1 %vm393_vm1, %v386_v5 }
 0x164   :  { %v626_v58 = vpop.permute.xlu1 %625 }
 0x165   :  { %1391 = vmatmul.mubr.msk.f32.gmra.mrb[4].mxu1 %vm393_vm1, %v388_v1 }
 0x166   :  { %1393 = vmatprep.mubr.msk.f32.mxu1 %vm393_vm1, %v390_v26 }
 0x168   :  { %v590_v62 = vpop.permute.xlu1 %589 }
 0x169   :  { %1394 = vmatmul.mubr.msk.f32.gmra.mrb[6].mxu1 %vm393_vm1, %v392_v28 }
 0x230   :  { %v1947_v7 = vpop.f32.mrb[0].mxu1 }
 0x231   :  { %v529_v31 = vmul.f32 %v1947_v7, %v1947_v7  ;;  %v1951_v11 = vpop.f32.mrb[1].mxu1 }
 0x232   :  { %v515_v24 = vadd.f32 %v1947_v7, %v1951_v11  ;;  %v528_v27 = vmul.f32 %v1951_v11, %v1951_v11 }
 0x234   :  { %v536_v29 = vadd.f32 %v529_v31, %v528_v27  ;;  %v1959_v13 = vpop.f32.mrb[2].mxu1 }
 0x235   :  { %v1963_v8 = vpop.f32.mrb[3].mxu1  ;;  %v531_v32 = vmul.f32 %v1959_v13, %v1959_v13 }
 0x236   :  { %v516_v30 = vadd.f32 %v515_v24, %v1963_v8  ;;  %v530_v16 = vmul.f32 %v1963_v8, %v1963_v8 }
 0x238   :  { %v537_v17 = vadd.f32 %v536_v29, %v530_v16  ;;  %v1972_v18 = vpop.f32.mrb[4].mxu1  ;;  %v517_v19 = vadd.f32 %v1959_v13, %v516_v30  ;;  %v630_v30 = vpop.permute.xlu1 %629 }
 0x239   :  { %v1975_v22 = vpop.f32.mrb[5].mxu1  ;;  %v533_v41 = vmul.f32 %v1972_v18, %v1972_v18 }
 0x23a   :  { %v518_v33 = vadd.f32 %v517_v19, %v1975_v22  ;;  %v532_v37 = vmul.f32 %v1975_v22, %v1975_v22  ;;  %v538_v39 = vadd.f32 %v537_v17, %v531_v32  ;;  %v2025_v32 = vld [vmem:[#allocation2 + $0x50] sm:$0xff] }
 0x23b   :  { %1041 = vrot.lane.b32.xlu1 %v2025_v32, %s1691_s21 }
 0x23c   :  { %v539_v44 = vadd.f32 %v538_v39, %v532_v37  ;;  %v1984_v21 = vpop.f32.mrb[6].mxu1  ;;  %v519_v45 = vadd.f32 %v1972_v18, %v518_v33 }
 0x23d   :  { %v1989_v46 = vpop.f32.mrb[7].mxu1  ;;  %v535_v51 = vmul.f32 %v1984_v21, %v1984_v21 }
 0x23e   :  { %v520_v47 = vadd.f32 %v519_v45, %v1989_v46  ;;  %v534_v34 = vmul.f32 %v1989_v46, %v1989_v46  ;;  %v540_v49 = vadd.f32 %v539_v44, %v533_v41 }
 0x240   :  { %v521_v38 = vadd.f32 %v1984_v21, %v520_v47  ;;  %v541_v42 = vadd.f32 %v540_v49, %v534_v34 }
 0x242   :  { %v522_v53 = vrot.slane %v521_v38, 4  ;;  %v542_v50 = vadd.f32 %v541_v42, %v535_v51 }
 0x244   :  { %v523_v54 = vadd.f32 %v522_v53, %v521_v38  ;;  %v543_v43 = vrot.slane %v542_v50, 4 }
 0x246   :  { %v524_v55 = vrot.slane %v523_v54, 2  ;;  %v544_v57 = vadd.f32 %v543_v43, %v542_v50 }
 0x248   :  { %v525_v56 = vadd.f32 %v524_v55, %v523_v54  ;;  %v545_v59 = vrot.slane %v544_v57, 2 }
 0x24a   :  { %v526_v9 = vrot.slane %v525_v56, 1  ;;  %v546_v60 = vadd.f32 %v545_v59, %v544_v57 }
 0x24c   :  { %v527_v10 = vadd.f32 %v526_v9, %v525_v56  ;;  %v547_v23 = vrot.slane %v546_v60, 1 }
 0x24e   :  { %v548_v63 = vadd.f32 %v547_v23, %v546_v60  ;;  %v549_v0 = vmul.f32 0.015625, %v527_v10 }
 0x250   :  { %v550_v2 = vmul.f32 0.015625, %v548_v63  ;;  %v551_v3 = vmul.f32 %v549_v0, %v549_v0  ;;  %v560_v4 = vsub.f32 %v1989_v46, %v549_v0  ;;  %v554_v5 = vsub.f32 %v1951_v11, %v549_v0 }
 0x251   :  { %v557_v1 = vsub.f32 %v1959_v13, %v549_v0  ;;  %v555_v26 = vsub.f32 %v1947_v7, %v549_v0  ;;  %v558_v28 = vsub.f32 %v1975_v22, %v549_v0  ;;  %v556_v31 = vsub.f32 %v1963_v8, %v549_v0  ;;  %v594_v7 = vpop.permute.xlu0 %593  ;;  %v634_v13 = vpop.permute.xlu1 %633 }
 0x252   :  { %v552_v24 = vsub.f32 %v550_v2, %v551_v3  ;;  %v559_v27 = vsub.f32 %v1972_v18, %v549_v0  ;;  %v561_v29 = vsub.f32 %v1984_v21, %v549_v0 }
 0x254   :  { %v553_v16 = vmax.f32 %v552_v24, 0.0 }
 0x255   :  { %v598_v8 = vpop.permute.xlu0 %597  ;;  %v602_v17 = vpop.permute.xlu1 %601 }
 0x256   :  { %v562_v11 = vadd.f32 0.001, %v553_v16 }
 0x258   :  { %1564 = vrsqrt.f32 %v562_v11 }
 0x259   :  { %v638_v47 = vpop.permute.xlu0 %637  ;;  %v642_v34 = vpop.permute.xlu1 %641 }
 0x262   :  { %v1565_v18 = vpop.eup %1564 }
 0x263   :  { %v564_v19 = vmul.f32 %v1565_v18, %v554_v5  ;;  %v567_v22 = vmul.f32 %v1565_v18, %v557_v1  ;;  %v565_v33 = vmul.f32 %v1565_v18, %v555_v26  ;;  %v568_v37 = vmul.f32 %v1565_v18, %v558_v28 }
 0x264   :  { %v566_v39 = vmul.f32 %v1565_v18, %v556_v31  ;;  %v569_v20 = vmul.f32 %v1565_v18, %v559_v27  ;;  %v570_v25 = vmul.f32 %v1565_v18, %v560_v4  ;;  %v571_v41 = vmul.f32 %v1565_v18, %v561_v29 }
 0x265   :  { %v604_v44 = vmul.f32 %v1945_v6, %v564_v19  ;;  %v607_v21 = vmul.f32 %v1998_v36, %v567_v22  ;;  %v605_v45 = vmul.f32 %v578_v61, %v565_v33  ;;  %v608_v46 = vmul.f32 %v590_v62, %v568_v37 }
 0x266   :  { %v606_v49 = vmul.f32 %v582_v14, %v566_v39  ;;  %v609_v51 = vmul.f32 %v594_v7, %v569_v20  ;;  %v610_v38 = vmul.f32 %v598_v8, %v570_v25  ;;  %v611_v42 = vmul.f32 %v602_v17, %v571_v41 }
 0x267   :  { %v644_v52 = vadd.f32 %v1965_v15, %v604_v44  ;;  %v647_v53 = vadd.f32 %v626_v58, %v607_v21  ;;  %v2033_v50 = vadd.f32 %v1980_v40, %v605_v45  ;;  %v2035_v54 = vadd.f32 %v630_v30, %v608_v46 }
 0x268   :  { %v2038_v6 = vadd.f32 %v2003_v48, %v606_v49  ;;  %v2040_v36 = vadd.f32 %v634_v13, %v609_v51  ;;  %v2042_v43 = vadd.f32 %v638_v47, %v610_v38  ;;  %v2044_v55 = vadd.f32 %v642_v34, %v611_v42 }
 0x269   :  { %v652_v57 = vsub.f32 0.0, %v644_v52  ;;  %v655_v56 = vsub.f32 0.0, %v647_v53  ;;  %v653_v59 = vsub.f32 0.0, %v2033_v50  ;;  %v656_v15 = vsub.f32 0.0, %v2035_v54 }
 0x26a   :  { %v654_v40 = vsub.f32 0.0, %v2038_v6  ;;  %v657_v58 = vsub.f32 0.0, %v2040_v36  ;;  %v658_v9 = vsub.f32 0.0, %v2042_v43  ;;  %v659_v61 = vsub.f32 0.0, %v2044_v55 }
 0x26b   :  { %v660_v48 = vmul.f32 1.442695, %v652_v57  ;;  %v666_v60 = vmul.f32 1.442695, %v655_v56  ;;  %v662_v10 = vmul.f32 1.442695, %v653_v59  ;;  %v748_v8 = vlaneseq }
 0x26c   :  { %v664_v23 = vmul.f32 1.442695, %v654_v40  ;;  %v668_v62 = vmul.f32 1.442695, %v656_v15  ;;  %v670_v63 = vmul.f32 1.442695, %v657_v58 }
 0x26d   :  { %1566 = vpow2.f32 %v660_v48  ;;  %v672_v0 = vmul.f32 1.442695, %v658_v9  ;;  %v674_v2 = vmul.f32 1.442695, %v659_v61  ;;  %v749_v33 = vshrl.u32 %v748_v8, 7 }
 0x26e   :  { %1568 = vpow2.f32 %v666_v60 }
 0x26f   :  { %1570 = vpow2.f32 %v662_v10  ;;  %v2055_v51 = vcvt.s32.f32 %v749_v33 }
 0x270   :  { %1572 = vpow2.f32 %v664_v23 }
 0x271   :  { %1574 = vpow2.f32 %v668_v62 }
 0x272   :  { %1576 = vpow2.f32 %v670_v63 }
 0x273   :  { %1578 = vpow2.f32 %v672_v0 }
 0x274   :  { %1580 = vpow2.f32 %v674_v2 }
 0x277   :  { %v1567_v3 = vpop.eup %1566 }
 0x278   :  { %v1569_v4 = vpop.eup %1568  ;;  %v676_v5 = vadd.f32 1.0, %v1567_v3 }
 0x279   :  { %v1571_v1 = vpop.eup %1570  ;;  %v679_v26 = vadd.f32 1.0, %v1569_v4 }
 0x27a   :  { %v1573_v28 = vpop.eup %1572  ;;  %1582 = vrcp.f32 %v676_v5  ;;  %v677_v31 = vadd.f32 1.0, %v1571_v1 }
 0x27b   :  { %v1575_v24 = vpop.eup %1574  ;;  %1584 = vrcp.f32 %v679_v26  ;;  %v678_v27 = vadd.f32 1.0, %v1573_v28 }
 0x27c   :  { %v1577_v29 = vpop.eup %1576  ;;  %1586 = vrcp.f32 %v677_v31  ;;  %v680_v14 = vadd.f32 1.0, %v1575_v24 }
 0x27d   :  { %v1579_v30 = vpop.eup %1578  ;;  %1588 = vrcp.f32 %v678_v27  ;;  %v681_v16 = vadd.f32 1.0, %v1577_v29 }
 0x27e   :  { %v1581_v11 = vpop.eup %1580  ;;  %1590 = vrcp.f32 %v680_v14  ;;  %v682_v7 = vadd.f32 1.0, %v1579_v30 }
 0x27f   :  { %1592 = vrcp.f32 %v681_v16  ;;  %v683_v13 = vadd.f32 1.0, %v1581_v11 }
 0x280   :  { %1594 = vrcp.f32 %v682_v7 }
 0x281   :  { %1596 = vrcp.f32 %v683_v13 }
 0x284   :  { %v1583_v17 = vpop.eup %1582 }
 0x285   :  { %v1585_v18 = vpop.eup %1584  ;;  %v692_v19 = vmul.f32 %v1583_v17, %v644_v52 }
 0x286   :  { %v1587_v22 = vpop.eup %1586  ;;  %v695_v37 = vmul.f32 %v1585_v18, %v647_v53 }
 0x287   :  { %v1589_v39 = vpop.eup %1588  ;;  %v700_v20 = vrot.slane %v692_v19, 4  ;;  %v693_v25 = vmul.f32 %v1587_v22, %v2033_v50 }
 0x288   :  { %v1591_v41 = vpop.eup %1590  ;;  %v718_v44 = vrot.slane %v695_v37, 4  ;;  %v694_v21 = vmul.f32 %v1589_v39, %v2038_v6 }
 0x289   :  { %v1593_v45 = vpop.eup %1592  ;;  %v701_v46 = vmax.f32 %v692_v19, %v700_v20  ;;  %v706_v47 = vrot.slane %v693_v25, 4  ;;  %v696_v34 = vmul.f32 %v1591_v41, %v2035_v54 }
 0x28a   :  { %v1595_v49 = vpop.eup %1594  ;;  %v719_v38 = vmax.f32 %v695_v37, %v718_v44  ;;  %v712_v42 = vrot.slane %v694_v21, 4  ;;  %v697_v52 = vmul.f32 %v1593_v45, %v2040_v36 }
 0x28b   :  { %v1597_v53 = vpop.eup %1596  ;;  %v702_v57 = vrot.slane %v701_v46, 2  ;;  %v707_v56 = vmax.f32 %v693_v25, %v706_v47  ;;  %v724_v50 = vrot.slane %v696_v34, 4  ;;  %v2059_v59 = vmul.f32 %v1595_v49, %v2042_v43 }
 0x28c   :  { %v720_v6 = vrot.slane %v719_v38, 2  ;;  %v713_v15 = vmax.f32 %v694_v21, %v712_v42  ;;  %v730_v40 = vrot.slane %v697_v52, 4  ;;  %v2062_v58 = vmul.f32 %v1597_v53, %v2044_v55 }
 0x28d   :  { %v703_v54 = vmax.f32 %v701_v46, %v702_v57  ;;  %v708_v9 = vrot.slane %v707_v56, 2  ;;  %v725_v48 = vmax.f32 %v696_v34, %v724_v50  ;;  %v736_v60 = vrot.slane %v2059_v59, 4 }
 0x28e   :  { %v721_v10 = vmax.f32 %v719_v38, %v720_v6  ;;  %v714_v36 = vrot.slane %v713_v15, 2  ;;  %v731_v23 = vmax.f32 %v697_v52, %v730_v40  ;;  %v742_v61 = vrot.slane %v2062_v58, 4 }
 0x28f   :  { %v704_v62 = vrot.slane %v703_v54, 1  ;;  %v709_v63 = vmax.f32 %v707_v56, %v708_v9  ;;  %v726_v43 = vrot.slane %v725_v48, 2  ;;  %v737_v0 = vmax.f32 %v2059_v59, %v736_v60 }
 0x290   :  { %v722_v2 = vrot.slane %v721_v10, 1  ;;  %v715_v3 = vmax.f32 %v713_v15, %v714_v36  ;;  %v732_v4 = vrot.slane %v731_v23, 2  ;;  %v743_v55 = vmax.f32 %v2062_v58, %v742_v61 }
 0x291   :  { %v705_v5 = vmax.f32 %v703_v54, %v704_v62  ;;  %v710_v1 = vrot.slane %v709_v63, 1  ;;  %v727_v26 = vmax.f32 %v725_v48, %v726_v43  ;;  %v738_v28 = vrot.slane %v737_v0, 2 }
 0x292   :  { %v723_v31 = vmax.f32 %v721_v10, %v722_v2  ;;  %v716_v24 = vrot.slane %v715_v3, 1  ;;  %v733_v27 = vmax.f32 %v731_v23, %v732_v4  ;;  %v744_v29 = vrot.slane %v743_v55, 2 }
 0x293   :  { %vm751_vm2 = vcmp.eq.f32.partialorder %v692_v19, %v705_v5  ;;  %v711_v14 = vmax.f32 %v709_v63, %v710_v1  ;;  %v728_v30 = vrot.slane %v727_v26, 1  ;;  %v739_v16 = vmax.f32 %v737_v0, %v738_v28 }
 0x294   :  { %v759_v11 = vsel %vm751_vm2, %v2055_v51, 8.0  ;;  %vm754_vm3 = vcmp.eq.f32.partialorder %v695_v37, %v723_v31  ;;  %v717_v7 = vmax.f32 %v715_v3, %v716_v24  ;;  %v734_v13 = vrot.slane %v733_v27, 1 }
 0x295   :  { %v767_v8 = vrot.slane %v759_v11, 4  ;;  %v762_v17 = vsel %vm754_vm3, %v2055_v51, 8.0  ;;  %vm752_vm4 = vcmp.eq.f32.partialorder %v693_v25, %v711_v14  ;;  %v729_v18 = vmax.f32 %v727_v26, %v728_v30 }
 0x296   :  { %v785_v22 = vrot.slane %v762_v17, 4  ;;  %v760_v33 = vsel %vm752_vm4, %v2055_v51, 8.0  ;;  %vm753_vm5 = vcmp.eq.f32.partialorder %v694_v21, %v717_v7  ;;  %v735_v39 = vmax.f32 %v733_v27, %v734_v13 }
 0x297   :  { %v768_v20 = vmin.f32 %v759_v11, %v767_v8  ;;  %v773_v19 = vrot.slane %v760_v33, 4  ;;  %v761_v41 = vsel %vm753_vm5, %v2055_v51, 8.0  ;;  %vm755_vm6 = vcmp.eq.f32.partialorder %v696_v34, %v729_v18 }
 0x298   :  { %v786_v44 = vmin.f32 %v762_v17, %v785_v22  ;;  %v779_v45 = vrot.slane %v761_v41, 4  ;;  %v763_v37 = vsel %vm755_vm6, %v2055_v51, 8.0  ;;  %vm756_vm7 = vcmp.eq.f32.partialorder %v697_v52, %v735_v39  ;;  %v2092_v22 = vpop.permute.xlu1 %974 }
 0x299   :  { %v791_v46 = vrot.slane %v763_v37, 4  ;;  %v764_v47 = vsel %vm756_vm7, %v2055_v51, 8.0  ;;  %v740_v25 = vrot.slane %v739_v16, 1  ;;  %v745_v49 = vmax.f32 %v743_v55, %v744_v29 }
 0x29a   :  { %v797_v38 = vrot.slane %v764_v47, 4  ;;  %v769_v42 = vrot.slane %v768_v20, 2  ;;  %v774_v53 = vmin.f32 %v760_v33, %v773_v19  ;;  %v780_v21 = vmin.f32 %v761_v41, %v779_v45  ;;  %v1635_v41 = vld [vmem:[%s2140_s2 + $0x8] sm:$0xff] }
 0x29b   :  { %v792_v57 = vmin.f32 %v763_v37, %v791_v46  ;;  %v741_v56 = vmax.f32 %v739_v16, %v740_v25  ;;  %v746_v50 = vrot.slane %v745_v49, 1  ;;  %v787_v6 = vrot.slane %v786_v44, 2  ;;  %v1637_v37 = vld [vmem:[%s2140_s2 + $0x18] sm:$0xff] }
 0x29c   :  { %v798_v15 = vmin.f32 %v764_v47, %v797_v38  ;;  %v770_v34 = vmin.f32 %v768_v20, %v769_v42  ;;  %v775_v40 = vrot.slane %v774_v53, 2  ;;  %v781_v54 = vrot.slane %v780_v21, 2  ;;  %v2094_v33 = vpop.permute.xlu1 %994 }
 0x29d   :  { %vm757_vm8 = vcmp.eq.f32.partialorder %v2059_v59, %v741_v56  ;;  %v747_v52 = vmax.f32 %v745_v49, %v746_v50  ;;  %v788_v9 = vmin.f32 %v786_v44, %v787_v6  ;;  %v793_v48 = vrot.slane %v792_v57, 2  ;;  %v1636_v44 = vld [vmem:[%s2140_s2 + $0x10] sm:$0xff] }
 0x29e   :  { %v765_v60 = vsel %vm757_vm8, %v2055_v51, 8.0  ;;  %v771_v10 = vrot.slane %v770_v34, 1  ;;  %v776_v36 = vmin.f32 %v774_v53, %v775_v40  ;;  %v782_v23 = vmin.f32 %v780_v21, %v781_v54 }
 0x29f   :  { %v803_v61 = vrot.slane %v765_v60, 4  ;;  %vm758_vm9 = vcmp.eq.f32.partialorder %v2062_v58, %v747_v52  ;;  %v789_v62 = vrot.slane %v788_v9, 1  ;;  %v794_v63 = vmin.f32 %v792_v57, %v793_v48 }
 0x2a0   :  { %v766_v43 = vsel %vm758_vm9, %v2055_v51, 8.0  ;;  %v772_v0 = vmin.f32 %v770_v34, %v771_v10  ;;  %v777_v2 = vrot.slane %v776_v36, 1  ;;  %v783_v3 = vrot.slane %v782_v23, 1  ;;  %v2096_v39 = vpop.permute.xlu1 %998 }
 0x2a1   :  { %v804_v4 = vmin.f32 %v765_v60, %v803_v61  ;;  %v809_v59 = vrot.slane %v766_v43, 4  ;;  %v790_v55 = vmin.f32 %v788_v9, %v789_v62  ;;  %v795_v5 = vrot.slane %v794_v63, 1 }
 0x2a2   :  { %v778_v1 = vmin.f32 %v776_v36, %v777_v2  ;;  %vm815_vm10 = vcmp.eq.f32.partialorder %v2055_v51, %v772_v0  ;;  %v784_v26 = vmin.f32 %v782_v23, %v783_v3  ;;  %v799_v28 = vrot.slane %v798_v15, 2 }
 0x2a3   :  { %v810_v31 = vmin.f32 %v766_v43, %v809_v59  ;;  %vm818_vm11 = vcmp.eq.f32.partialorder %v2055_v51, %v790_v55  ;;  %v805_v58 = vrot.slane %v804_v4, 2  ;;  %v796_v24 = vmin.f32 %v794_v63, %v795_v5 }
 0x2a4   :  { %vm816_vm12 = vcmp.eq.f32.partialorder %v2055_v51, %v778_v1  ;;  %vm817_vm13 = vcmp.eq.f32.partialorder %v2055_v51, %v784_v26  ;;  %v800_v27 = vmin.f32 %v798_v15, %v799_v28  ;;  %v1696_v30 = vmov 1.0|1.0   ;;  %v979_v28 = vpop.permute.xlu0 %978 }
 0x2a5   :  { %vm1456_vm14 = vmpackc.low %vm816_vm12, %vm815_vm10  ;;  %v806_v29 = vmin.f32 %v804_v4, %v805_v58  ;;  %v811_v14 = vrot.slane %v810_v31, 2  ;;  %vm819_vm2 = vcmp.eq.f32.partialorder %v2055_v51, %v796_v24  ;;  %v1698_v45 = vmov 7  }
 0x2a6   :  { %1457 = vmatprep.subr.msk.bf16.mxu0 %vm1456_vm14, %v1696_v30  ;;  %vm1460_vm15 = vmpackc.low %vm818_vm11, %vm817_vm13  ;;  %v801_v16 = vrot.slane %v800_v27, 1 }
 0x2a7   :  { %1459 = vmatpush3.bf16.msk.msra.mxu0 %vm1456_vm14, %v1696_v30  ;;  %v807_v11 = vrot.slane %v806_v29, 1  ;;  %v812_v7 = vmin.f32 %v810_v31, %v811_v14 }
 0x2a8   :  { %1461 = vmatprep.subr.msk.bf16.mxu0 %vm1460_vm15, %v1696_v30  ;;  %v802_v13 = vmin.f32 %v800_v27, %v801_v16  ;;  %v983_v31 = vpop.permute.xlu0 %982 }
 0x2a9   :  { %v808_v8 = vmin.f32 %v806_v29, %v807_v11  ;;  %v813_v17 = vrot.slane %v812_v7, 1 }
 0x2aa   :  { %vm820_vm3 = vcmp.eq.f32.partialorder %v2055_v51, %v802_v13 }
 0x2ab   :  { %1463 = vmatpush3.bf16.msk.msra.mxu0 %vm1460_vm15, %v1696_v30  ;;  %vm1464_vm4 = vmpackc.low %vm820_vm3, %vm819_vm2  ;;  %v814_v18 = vmin.f32 %v812_v7, %v813_v17  ;;  %vm821_vm5 = vcmp.eq.f32.partialorder %v2055_v51, %v808_v8 }
 0x2ac   :  { %1465 = vmatprep.subr.msk.bf16.mxu0 %vm1464_vm4, %v1696_v30 }
 0x2ad   :  { %vm822_vm6 = vcmp.eq.f32.partialorder %v2055_v51, %v814_v18  ;;  %v2098_v51 = vpop.permute.xlu1 %986 }
 0x2ae   :  { %vm1468_vm7 = vmpackc.low %vm822_vm6, %vm821_vm5 }
 0x2af   :  { %1467 = vmatpush3.bf16.msk.msra.mxu0 %vm1464_vm4, %v1696_v30 }
 0x2b0   :  { %1469 = vmatprep.subr.msk.bf16.mxu0 %vm1468_vm7, %v1696_v30 }
 0x2b1   :  { %v2100_v20 = vpop.permute.xlu1 %1006 }
 0x2b3   :  { %1471 = vmatpush3.bf16.msk.msra.mxu0 %vm1468_vm7, %v1696_v30  ;;  %v1003_v30 = vpop.permute.xlu0 %1002 }
 0x2b5   :  { %v1038_v19 = vpop.permute.xlu1 %1037 }
 0x2b6   :  { %1413 = vmatmul.mubr.msk.f32.vlgmr.msra.gmra.mrb[8].mxu0 %vm393_vm1, %v2005_v35 }
 0x2b7   :  { %1415 = vmatprep.mubr.msk.f32.mxu0 %vm393_vm1, %v2025_v32  ;;  %v1697_v32 = vmov 6  }
 0x2b8   :  { %1526 = vset.pattern.permute.xlu1 %v1697_v32  ;;  %1527 = vset.pattern.permute.xlu0 %v1697_v32 }
 0x2b9   :  { %v1042_v35 = vpop.permute.xlu1 %1041  ;;  %1180 = vperm.xlu0 %1527, %v1635_v41  }
 0x2ba   :  { %1416 = vmatmul.mubr.msk.f32.gmra.mrb[10].mxu0 %vm393_vm1, %v2010_v12  ;;  %1429 = vmatprep.mubr.msk.f32.mxu1 %vm54_vm0, %v1042_v35  ;;  %v1634_v12 = vld [vmem:[%s2140_s2] sm:$0xff]  ;;  %s1699_s2 = smov [#allocation5]  }
 0x2bb   :  { %1426 = vmatprep.mubr.msk.f32.mxu0 %vm54_vm0, %v1038_v19  ;;  %1176 = vperm.xlu1 %1526, %v1634_v12   ;;  %s1248_s1 = sshll.u32 %s1699_s2, 4  ;;  %s1249_s1 = int_to_ptr.vmem [resolvable:$true] %s1248_s1 }
 0x2bc   :  { %s1660_s5 = scalar_lea.vmem %s1249_s1, 512  ;;  %p1665_p9 = scmp.lt.s32.totalorder %s1249_s1, %s1249_s1 }
 0x2bd   :  { %1528 = vset.pattern.permute.xlu0 %v1698_v45  ;;  %p1661_p8 = scmp.ne.s32.totalorder %s1249_s1, %s1660_s5  ;;  %p1666_p10 = scmp.lt.s32.totalorder %s1660_s5, %s1660_s5 }
 0x2be   :  { %1196 = vperm.xlu0 %1528, %v1634_v12  }
 0x2bf   :  { %1184 = vperm.xlu1 %1526, %v1636_v44   ;;  %p1667_p11 = por %p1666_p10, %p1665_p9 }
 0x2c1   :  { %p1668_p12 = pnand %p1667_p11, %p1661_p8 }
 0x2c2   :  { %1208 = vperm.xlu0 %1528, %v1637_v37  }
 0x2c3   :  { %1188 = vperm.xlu1 %1526, %v1637_v37  }
 0x2c7   :  { %1529 = vset.pattern.permute.xlu1 %v1698_v45 }
 0x2c8   :  { %1200 = vperm.xlu1 %1529, %v1635_v41  }
 0x2cc   :  { %1204 = vperm.xlu1 %1529, %v1636_v44  }
 0x389   :  { %v1414_v46 = vpop.f32.mrb[8].mxu0 }
 0x38a   :  { %v946_v47 = vmul.f32 %v1414_v46, %v1414_v46  ;;  %v917_v25 = vpop.f32.mrb[9].mxu0 }
 0x38b   :  { %v936_v49 = vadd.f32 %v1414_v46, %v917_v25  ;;  %v945_v38 = vmul.f32 %v917_v25, %v917_v25 }
 0x38d   :  { %v949_v42 = vadd.f32 %v946_v47, %v945_v38  ;;  %v1417_v53 = vpop.f32.mrb[10].mxu0 }
 0x38e   :  { %v927_v21 = vpop.f32.mrb[11].mxu0  ;;  %v948_v50 = vmul.f32 %v1417_v53, %v1417_v53 }
 0x38f   :  { %v937_v57 = vadd.f32 %v936_v49, %v927_v21  ;;  %v947_v56 = vmul.f32 %v927_v21, %v927_v21 }
 0x391   :  { %v938_v6 = vadd.f32 %v1417_v53, %v937_v57  ;;  %v950_v15 = vadd.f32 %v949_v42, %v947_v56 }
 0x393   :  { %v939_v34 = vrot.slane %v938_v6, 4  ;;  %v951_v40 = vadd.f32 %v950_v15, %v948_v50 }
 0x395   :  { %v940_v54 = vadd.f32 %v939_v34, %v938_v6  ;;  %v952_v52 = vrot.slane %v951_v40, 4  ;;  %v1040_v34 = vpop.permute.xlu0 %1039 }
 0x397   :  { %v941_v9 = vrot.slane %v940_v54, 2  ;;  %v953_v48 = vadd.f32 %v952_v52, %v951_v40 }
 0x399   :  { %v942_v60 = vadd.f32 %v941_v9, %v940_v54  ;;  %v954_v10 = vrot.slane %v953_v48, 2  ;;  %v1044_v54 = vpop.permute.xlu0 %1043 }
 0x39b   :  { %v943_v36 = vrot.slane %v942_v60, 1  ;;  %v955_v23 = vadd.f32 %v954_v10, %v953_v48 }
 0x39d   :  { %v944_v61 = vadd.f32 %v943_v36, %v942_v60  ;;  %v956_v62 = vrot.slane %v955_v23, 1 }
 0x39f   :  { %v957_v63 = vadd.f32 %v956_v62, %v955_v23  ;;  %v958_v43 = vmul.f32 0.03125, %v944_v61 }
 0x3a1   :  { %v959_v0 = vmul.f32 0.03125, %v957_v63  ;;  %v960_v2 = vmul.f32 %v958_v43, %v958_v43  ;;  %v965_v3 = vsub.f32 %v927_v21, %v958_v43  ;;  %v963_v4 = vsub.f32 %v917_v25, %v958_v43 }
 0x3a2   :  { %v964_v59 = vsub.f32 %v1414_v46, %v958_v43  ;;  %v966_v55 = vsub.f32 %v1417_v53, %v958_v43 }
 0x3a3   :  { %v961_v5 = vsub.f32 %v959_v0, %v960_v2 }
 0x3a5   :  { %v962_v1 = vmax.f32 %v961_v5, 0.0 }
 0x3a7   :  { %v967_v26 = vadd.f32 0.001, %v962_v1 }
 0x3a9   :  { %1598 = vrsqrt.f32 %v967_v26 }
 0x3b3   :  { %v1599_v58 = vpop.eup %1598 }
 0x3b4   :  { %v969_v24 = vmul.f32 %v1599_v58, %v963_v4  ;;  %v970_v27 = vmul.f32 %v1599_v58, %v964_v59  ;;  %v971_v29 = vmul.f32 %v1599_v58, %v965_v3  ;;  %v972_v14 = vmul.f32 %v1599_v58, %v966_v55 }
 0x3b6   :  { %v989_v16 = vmul.f32 %v2092_v22, %v969_v24  ;;  %v990_v11 = vmul.f32 %v979_v28, %v970_v27  ;;  %v991_v7 = vmul.f32 %v983_v31, %v971_v29  ;;  %v992_v13 = vmul.f32 %v2098_v51, %v972_v14 }
 0x3b8   :  { %v1009_v8 = vadd.f32 %v2094_v33, %v989_v16  ;;  %v1010_v17 = vadd.f32 %v2096_v39, %v990_v11  ;;  %v1011_v18 = vadd.f32 %v1003_v30, %v991_v7  ;;  %v1012_v19 = vadd.f32 %v2100_v20, %v992_v13  ;;  %v1177_v7 = vpop.permute.xlu1 %1176 }
 0x3ba   :  { %v1013_v35 = vsub.f32 0.0, %v1009_v8  ;;  %v1014_v32 = vsub.f32 0.0, %v1010_v17  ;;  %v1015_v12 = vsub.f32 0.0, %v1011_v18  ;;  %v1016_v41 = vsub.f32 0.0, %v1012_v19 }
 0x3bc   :  { %v1017_v44 = vmul.f32 1.442695, %v1013_v35  ;;  %v1019_v45 = vmul.f32 1.442695, %v1014_v32  ;;  %v1021_v37 = vmul.f32 1.442695, %v1015_v12  ;;  %v1185_v32 = vpop.permute.xlu1 %1184  ;;  %v1181_v12 = vpop.permute.xlu0 %1180 }
 0x3bd   :  { %v1023_v46 = vmul.f32 1.442695, %v1016_v41 }
 0x3be   :  { %1600 = vpow2.f32 %v1017_v44 }
 0x3bf   :  { %1602 = vpow2.f32 %v1019_v45 }
 0x3c0   :  { %1604 = vpow2.f32 %v1021_v37  ;;  %v1189_v41 = vpop.permute.xlu1 %1188  ;;  %v1197_v44 = vpop.permute.xlu0 %1196 }
 0x3c1   :  { %1606 = vpow2.f32 %v1023_v46 }
 0x3c4   :  { %v1201_v45 = vpop.permute.xlu1 %1200 }
 0x3c8   :  { %v1601_v22 = vpop.eup %1600 }
 0x3c9   :  { %v1603_v51 = vpop.eup %1602  ;;  %v1025_v33 = vadd.f32 1.0, %v1601_v22 }
 0x3ca   :  { %v1605_v47 = vpop.eup %1604  ;;  %v1026_v39 = vadd.f32 1.0, %v1603_v51 }
 0x3cb   :  { %v1607_v25 = vpop.eup %1606  ;;  %1608 = vrcp.f32 %v1025_v33  ;;  %v1027_v20 = vadd.f32 1.0, %v1605_v47 }
 0x3cc   :  { %1610 = vrcp.f32 %v1026_v39  ;;  %v1028_v49 = vadd.f32 1.0, %v1607_v25 }
 0x3cd   :  { %1612 = vrcp.f32 %v1027_v20 }
 0x3ce   :  { %1614 = vrcp.f32 %v1028_v49  ;;  %v1209_v49 = vpop.permute.xlu0 %1208 }
 0x3d5   :  { %v1609_v38 = vpop.eup %1608 }
 0x3d6   :  { %v1611_v42 = vpop.eup %1610  ;;  %v1033_v53 = vmul.f32 %v1609_v38, %v1009_v8  ;;  %v1205_v38 = vpop.permute.xlu1 %1204 }
 0x3d7   :  { %v1613_v21 = vpop.eup %1612  ;;  %v1034_v57 = vmul.f32 %v1611_v42, %v1010_v17 }
 0x3d8   :  { %v1615_v56 = vpop.eup %1614  ;;  %v1035_v50 = vmul.f32 %v1613_v21, %v1011_v18 }
 0x3d9   :  { %v1472_v6 = vpack.c.bf16 %v1034_v57, %v1033_v53  ;;  %v1036_v15 = vmul.f32 %v1615_v56, %v1012_v19 }
 0x3db   :  { %v1476_v40 = vpack.c.bf16 %v1036_v15, %v1035_v50  ;;  %1473 = vmatprep.subr.bf16.mxu0 %v1472_v6  ;;  %1480 = vmatprep.subr.bf16.mxu1 %v1472_v6 }
 0x3dc   :  { %1475 = vmatpush3.bf16.msra.mxu0 %v1472_v6  ;;  %1482 = vmatpush3.bf16.msra.mxu1 %v1472_v6 }
 0x3dd   :  { %1477 = vmatprep.subr.bf16.mxu0 %v1476_v40  ;;  %1481 = vmatprep.subr.bf16.mxu1 %v1476_v40 }
 0x3e0   :  { %1479 = vmatpush3.bf16.msra.mxu0 %v1476_v40  ;;  %1483 = vmatpush3.bf16.msra.mxu1 %v1476_v40 }
 0x3e3   :  { %1427 = vmatmul.mubr.msk.f32.vlgmr.msra.gmra.mrb[12].mxu0 %vm54_vm0, %v1040_v34  ;;  %1430 = vmatmul.mubr.msk.f32.vlgmr.msra.gmra.mrb[8].mxu1 %vm54_vm0, %v1044_v54 }
 0x4b6   :  { %v1428_v52 = vpop.f32.mrb[12].mxu0  ;;  %v1431_v9 = vpop.f32.mrb[8].mxu1 }
 0x4b7   :  { %v1148_v48 = vmul.f32 %v1428_v52, %v1428_v52  ;;  %v1119_v60 = vpop.f32.mrb[13].mxu0  ;;  %v1129_v10 = vpop.f32.mrb[9].mxu1  ;;  %v1150_v43 = vmul.f32 %v1431_v9, %v1431_v9 }
 0x4b8   :  { %v1138_v36 = vadd.f32 %v1428_v52, %v1119_v60  ;;  %v1147_v23 = vmul.f32 %v1119_v60, %v1119_v60  ;;  %v1149_v61 = vmul.f32 %v1129_v10, %v1129_v10 }
 0x4ba   :  { %v1151_v62 = vadd.f32 %v1148_v48, %v1147_v23  ;;  %v1139_v63 = vadd.f32 %v1138_v36, %v1129_v10 }
 0x4bc   :  { %v1140_v0 = vadd.f32 %v1431_v9, %v1139_v63  ;;  %v1152_v2 = vadd.f32 %v1151_v62, %v1149_v61 }
 0x4be   :  { %v1141_v3 = vrot.slane %v1140_v0, 4  ;;  %v1153_v4 = vadd.f32 %v1152_v2, %v1150_v43 }
 0x4c0   :  { %v1142_v59 = vadd.f32 %v1141_v3, %v1140_v0  ;;  %v1154_v55 = vrot.slane %v1153_v4, 4 }
 0x4c2   :  { %v1143_v5 = vrot.slane %v1142_v59, 2  ;;  %v1155_v1 = vadd.f32 %v1154_v55, %v1153_v4 }
 0x4c4   :  { %v1144_v26 = vadd.f32 %v1143_v5, %v1142_v59  ;;  %v1156_v28 = vrot.slane %v1155_v1, 2 }
 0x4c6   :  { %v1145_v31 = vrot.slane %v1144_v26, 1  ;;  %v1157_v58 = vadd.f32 %v1156_v28, %v1155_v1 }
 0x4c8   :  { %v1146_v24 = vadd.f32 %v1145_v31, %v1144_v26  ;;  %v1158_v27 = vrot.slane %v1157_v58, 1 }
 0x4ca   :  { %v1159_v29 = vadd.f32 %v1158_v27, %v1157_v58  ;;  %v1160_v14 = vmul.f32 0.03125, %v1146_v24 }
 0x4cc   :  { %v1161_v30 = vmul.f32 0.03125, %v1159_v29  ;;  %v1162_v16 = vmul.f32 %v1160_v14, %v1160_v14  ;;  %v1167_v11 = vsub.f32 %v1129_v10, %v1160_v14  ;;  %v1165_v13 = vsub.f32 %v1119_v60, %v1160_v14 }
 0x4cd   :  { %v1168_v8 = vsub.f32 %v1431_v9, %v1160_v14  ;;  %v1166_v17 = vsub.f32 %v1428_v52, %v1160_v14 }
 0x4ce   :  { %v1163_v18 = vsub.f32 %v1161_v30, %v1162_v16 }
 0x4d0   :  { %v1164_v19 = vmax.f32 %v1163_v18, 0.0 }
 0x4d2   :  { %v1169_v35 = vadd.f32 0.001, %v1164_v19 }
 0x4d4   :  { %1616 = vrsqrt.f32 %v1169_v35 }
 0x4de   :  { %v1617_v37 = vpop.eup %1616 }
 0x4df   :  { %v1171_v46 = vmul.f32 %v1617_v37, %v1165_v13  ;;  %v1173_v22 = vmul.f32 %v1617_v37, %v1167_v11  ;;  %v1174_v51 = vmul.f32 %v1617_v37, %v1168_v8  ;;  %v1172_v33 = vmul.f32 %v1617_v37, %v1166_v17 }
 0x4e1   :  { %v1191_v47 = vmul.f32 %v1177_v7, %v1171_v46  ;;  %v1193_v39 = vmul.f32 %v1185_v32, %v1173_v22  ;;  %v1194_v25 = vmul.f32 %v1189_v41, %v1174_v51  ;;  %v1192_v20 = vmul.f32 %v1181_v12, %v1172_v33 }
 0x4e3   :  { %v1211_v42 = vadd.f32 %v1197_v44, %v1191_v47  ;;  %v1212_v53 = vadd.f32 %v1201_v45, %v1192_v20  ;;  %v1214_v21 = vadd.f32 %v1209_v49, %v1194_v25  ;;  %v1213_v57 = vadd.f32 %v1205_v38, %v1193_v39 }
 0x4e5   :  { %v1215_v56 = vsub.f32 0.0, %v1211_v42  ;;  %v1216_v50 = vsub.f32 0.0, %v1212_v53  ;;  %v1218_v6 = vsub.f32 0.0, %v1214_v21  ;;  %v1217_v15 = vsub.f32 0.0, %v1213_v57 }
 0x4e7   :  { %v1219_v34 = vmul.f32 1.442695, %v1215_v56  ;;  %v1221_v40 = vmul.f32 1.442695, %v1216_v50  ;;  %v1225_v54 = vmul.f32 1.442695, %v1218_v6 }
 0x4e8   :  { %v1223_v52 = vmul.f32 1.442695, %v1217_v15 }
 0x4e9   :  { %1618 = vpow2.f32 %v1219_v34 }
 0x4ea   :  { %1620 = vpow2.f32 %v1221_v40 }
 0x4eb   :  { %1622 = vpow2.f32 %v1225_v54 }
 0x4ec   :  { %1624 = vpow2.f32 %v1223_v52 }
 0x4f3   :  { %v1619_v9 = vpop.eup %1618 }
 0x4f4   :  { %v1621_v48 = vpop.eup %1620  ;;  %v1227_v60 = vadd.f32 1.0, %v1619_v9 }
 0x4f5   :  { %v1623_v10 = vpop.eup %1622  ;;  %v1228_v36 = vadd.f32 1.0, %v1621_v48 }
 0x4f6   :  { %v1625_v23 = vpop.eup %1624  ;;  %1626 = vrcp.f32 %v1227_v60  ;;  %v1230_v61 = vadd.f32 1.0, %v1623_v10 }
 0x4f7   :  { %1628 = vrcp.f32 %v1228_v36  ;;  %v1229_v62 = vadd.f32 1.0, %v1625_v23 }
 0x4f8   :  { %1630 = vrcp.f32 %v1230_v61 }
 0x4f9   :  { %1632 = vrcp.f32 %v1229_v62 }
 0x500   :  { %v1627_v63 = vpop.eup %1626 }
 0x501   :  { %v1629_v43 = vpop.eup %1628  ;;  %v1235_v0 = vmul.f32 %v1627_v63, %v1211_v42 }
 0x502   :  { %v1631_v2 = vpop.eup %1630  ;;  %v1236_v3 = vmul.f32 %v1629_v43, %v1212_v53 }
 0x503   :  { %v1633_v4 = vpop.eup %1632  ;;  %1239 = vst [vmem:[#allocation5] sm:$0xff] %v1235_v0  ;;  %v1238_v59 = vmul.f32 %v1631_v2, %v1214_v21 }
 0x504   :  { %1240 = vst [vmem:[#allocation5 + $0x8] sm:$0xff] %v1236_v3  ;;  %v1237_v55 = vmul.f32 %v1633_v4, %v1213_v57 }
 0x505   :  { %1242 = vst [vmem:[#allocation5 + $0x18] sm:$0xff] %v1238_v59 }
 0x506   :  { %1241 = vst [vmem:[#allocation5 + $0x10] sm:$0xff] %v1237_v55 }
 0x507   :  { %1671 = shalt.err (!%p1668_p12)
}
 0x508   :  { %s1672_s8 = scalar_lea.hbm %s2141_s3, 512 }
 0x509   :  { %p1673_p13 = scmp.ne.s32.totalorder %s2141_s3, %s1672_s8  ;;  %p1676_p0 = scmp.lt.u32.totalorder %s1672_s8, %s2141_s3 }
 0x50b   :  { %p1678_p1 = pnand %p1676_p0, %p1673_p13 }
 0x50d   :  { %1681 = shalt.err (!%p1678_p1)
}
 0x50e   :  { %1254 = dma.vmem_to_hbm [thread:$0]  %s1249_s1, 512, %s2141_s3, [#allocation4], %s1687_s22, %s1687_s22, %s1688_s23  }
 0x50f   :  { %1684 = dma.done.wait [#allocation4], 512  }
 0x510   :  { %1685 = vsyncadd [#allocation4], 4294966784 }
 0x511   :  { %1258 = vsyncpa [#allocation3], 1 }
 0x512   :  { %1259 = vsyncpa [#allocation4], 1 }

</bundles_post_ra>
